<compile_context>
chip_gen: v7x
topology: tpu7x:2x2x1
jax: 0.10.0
libtpu: 0.0.40
codegen_flags: <defaults>
</compile_context>

<pallas_src>
import functools

import jax
import jax.numpy as jnp
from jax.experimental import pallas as pl
from jax.experimental.pallas import tpu as pltpu

TEMP_F = 0.5   # ViewContrastiveLoss.temperature_f
TEMP_U = 0.5   # UserInnerContrastiveLoss.temperature
# temperature_l (=1.0) is unused in the PyTorch forward pass.


# -----------------------------------------------------------------------------
# Fused kernel: one grid step = one (i, j) view pair + one per-view orth term.
# -----------------------------------------------------------------------------
def _all_loss_kernel(tbl_ref,                       # (3, G) int32 scalar-prefetch (unused in body)
                     spec_i_ref, spec_j_ref,        # (1, B, D) specific[i], specific[j]
                     sh_i_ref, sh_j_ref,            # (1, B, D) shared[i],   shared[j]
                     sh_o_ref, sp_o_ref,            # (1, B, D) shared[g],   specific[g]  (orth)
                     out_ref,                       # (1, 1) f32 SMEM accumulator
                     *, n_pairs, n_views, temp_f, temp_u,
                     a_contrastive, a_user, a_orth):
    del tbl_ref  # only consumed by the BlockSpec index_maps
    g = pl.program_id(0)

    @pl.when(g == 0)
    def _init():
        out_ref[0, 0] = jnp.float32(0.0)

    hi = spec_i_ref[0].astype(jnp.float32)          # (B, D)
    hj = spec_j_ref[0].astype(jnp.float32)
    si = sh_i_ref[0].astype(jnp.float32)
    sj = sh_j_ref[0].astype(jnp.float32)
    B = hi.shape[0]

    # ---- ViewContrastiveLoss(spec_i, spec_j) -------------------------------
    # sim blocks (no (2B, D) concat); denominator = logsumexp over full row of
    # the 2Bx2B sim with only the main diagonal removed (the PyTorch mask
    # gather merely permutes the negatives, which logsumexp ignores).
    inv_tf = jnp.float32(1.0 / temp_f)
    s_ii = jnp.dot(hi, hi.T, preferred_element_type=jnp.float32) * inv_tf
    s_jj = jnp.dot(hj, hj.T, preferred_element_type=jnp.float32) * inv_tf
    s_ij = jnp.dot(hi, hj.T, preferred_element_type=jnp.float32) * inv_tf
    s_ji = s_ij.T                                   # reuse for lower-left block

    row = jax.lax.broadcasted_iota(jnp.int32, (B, B), 0)
    col = jax.lax.broadcasted_iota(jnp.int32, (B, B), 1)
    diag = row == col
    neg = jnp.float32(-1e30)
    s_ii_m = jnp.where(diag, neg, s_ii)
    s_jj_m = jnp.where(diag, neg, s_jj)

    # positives = diag(S_ij) = row-wise dot, identical for both halves of the batch
    pos = jnp.sum(hi * hj, axis=1, keepdims=True) * inv_tf              # (B, 1)

    m_top = jnp.maximum(jnp.max(s_ii_m, axis=1, keepdims=True),
                        jnp.max(s_ij, axis=1, keepdims=True))
    lse_top = jnp.log(jnp.sum(jnp.exp(s_ii_m - m_top), axis=1, keepdims=True)
                      + jnp.sum(jnp.exp(s_ij - m_top), axis=1, keepdims=True)) + m_top
    m_bot = jnp.maximum(jnp.max(s_ji, axis=1, keepdims=True),
                        jnp.max(s_jj_m, axis=1, keepdims=True))
    lse_bot = jnp.log(jnp.sum(jnp.exp(s_ji - m_bot), axis=1, keepdims=True)
                      + jnp.sum(jnp.exp(s_jj_m - m_bot), axis=1, keepdims=True)) + m_bot
    contrastive = (jnp.sum(lse_top - pos) + jnp.sum(lse_bot - pos)) \
        * jnp.float32(1.0 / (2 * B))

    # ---- UserInnerContrastiveLoss(sh_i, sp_i, sh_j, sp_j) ------------------
    # Diagonals of the four PyTorch matmuls are exactly row-wise dot products.
    inv_tu = jnp.float32(1.0 / temp_u)
    l0 = jnp.sum(si * sj, axis=1, keepdims=True) * inv_tu               # positive
    l1 = jnp.sum(si * hj, axis=1, keepdims=True) * inv_tu
    l2 = jnp.sum(hi * sj, axis=1, keepdims=True) * inv_tu
    l3 = jnp.sum(hi * hj, axis=1, keepdims=True) * inv_tu
    m_u = jnp.maximum(jnp.maximum(l0, l1), jnp.maximum(l2, l3))
    lse_u = jnp.log(jnp.exp(l0 - m_u) + jnp.exp(l1 - m_u)
                    + jnp.exp(l2 - m_u) + jnp.exp(l3 - m_u)) + m_u
    user_inner = jnp.sum(lse_u - l0) * jnp.float32(1.0 / B)

    # ---- OrthogonalLoss(shared[g], specific[g]) ----------------------------
    # sigmoid -> F.normalize(dim=1, eps=1e-12) -> elementwise product -> mean.
    # rsqrt on clamped ||x||^2 (eps^2) == 1 / max(||x||, eps): exact semantics.
    sh = jax.nn.sigmoid(sh_o_ref[0].astype(jnp.float32))
    sp = jax.nn.sigmoid(sp_o_ref[0].astype(jnp.float32))
    inv_nsh = jax.lax.rsqrt(jnp.maximum(jnp.sum(sh * sh, axis=1, keepdims=True),
                                        jnp.float32(1e-24)))
    inv_nsp = jax.lax.rsqrt(jnp.maximum(jnp.sum(sp * sp, axis=1, keepdims=True),
                                        jnp.float32(1e-24)))
    orth = jnp.sum((sh * inv_nsh) * (sp * inv_nsp)) \
        * jnp.float32(1.0 / (sh.shape[0] * sh.shape[1]))

    # ---- weighted accumulation (grid may be padded when n_pairs != n_views)
    pair_w = jnp.where(g < n_pairs, jnp.float32(1.0), jnp.float32(0.0))
    orth_w = jnp.where(g < n_views, jnp.float32(1.0), jnp.float32(0.0))
    contrib = (pair_w * (jnp.float32(a_contrastive) * contrastive
                         + jnp.float32(a_user) * user_inner)
               + orth_w * jnp.float32(a_orth) * orth)
    out_ref[0, 0] = out_ref[0, 0] + contrib


# -----------------------------------------------------------------------------
# AllLoss forward: single fused pallas_call over view pairs.
# -----------------------------------------------------------------------------
def all_loss(view_specific, view_shared, alphas, temp_f=TEMP_F, temp_u=TEMP_U):
    V = len(view_specific)
    B, D = view_specific[0].shape
    spec = jnp.stack(view_specific, axis=0)        # (V, B, D)  stacked once
    shared = jnp.stack(view_shared, axis=0)        # (V, B, D)

    pairs = [(i, j) for i in range(V) for j in range(i + 1, V)]
    P = len(pairs)
    G = max(P, V)                                  # for V=3: P=V=G=3
    tbl = jnp.array(
        [[pairs[g][0] if g < P else 0 for g in range(G)],   # pair i index
         [pairs[g][1] if g < P else 0 for g in range(G)],   # pair j index
         [g if g < V else 0 for g in range(G)]],            # orth view index
        dtype=jnp.int32)                                     # (3, G)

    kernel = functools.partial(
        _all_loss_kernel, n_pairs=P, n_views=V, temp_f=temp_f, temp_u=temp_u,
        a_contrastive=float(alphas['contrastive']),
        a_user=float(alphas['user_inner']),
        a_orth=float(alphas['orth']))

    def view_block(table_row):
        # index_map receives (grid_idx, *scalar_prefetch_refs)
        return pl.BlockSpec(
            (1, B, D),
            lambda g, tbl_ref, r=table_row: (tbl_ref[r, g], 0, 0))

    out = pl.pallas_call(
        kernel,
        out_shape=jax.ShapeDtypeStruct((1, 1), jnp.float32),
        grid_spec=pltpu.PrefetchScalarGridSpec(
            num_scalar_prefetch=1,
            grid=(G,),
            in_specs=[view_block(0), view_block(1),    # specific[i], specific[j]
                      view_block(0), view_block(1),    # shared[i],   shared[j]
                      view_block(2), view_block(2)],   # shared[g],   specific[g]
            out_specs=pl.BlockSpec(memory_space=pltpu.MemorySpace.SMEM),
        ),
        compiler_params=pltpu.CompilerParams(
            # accumulator output is resident across the pair axis
            dimension_semantics=("arbitrary",)),
    )(tbl, spec, spec, shared, shared, shared, spec)
    return out[0, 0]


# -----------------------------------------------------------------------------
# Pure-JAX reference (mirrors the PyTorch math) for a sanity check.
# -----------------------------------------------------------------------------
def _ref_all_loss(view_specific, view_shared, alphas):
    def vc(h_i, h_j):
        B = h_i.shape[0]
        N = 2 * B
        h = jnp.concatenate([h_i, h_j], axis=0)
        sim = (h @ h.T) / TEMP_F
        row = jnp.arange(N)[:, None]
        col = jnp.arange(N)[None, :]
        pos = jnp.sum(jnp.where((col == row + B) | (col == row - B), sim, 0.0), axis=1)
        sim_m = jnp.where(row == col, -1e30, sim)
        m = jnp.max(sim_m, axis=1)
        lse = jnp.log(jnp.sum(jnp.exp(sim_m - m[:, None]), axis=1)) + m
        return jnp.sum(lse - pos) / N

    def ui(si, pi, sj, pj):
        B = si.shape[0]
        pos = jnp.sum(si * sj, axis=1) / TEMP_U
        logits = jnp.stack([pos,
                            jnp.sum(si * pj, axis=1) / TEMP_U,
                            jnp.sum(pi * sj, axis=1) / TEMP_U,
                            jnp.sum(pi * pj, axis=1) / TEMP_U], axis=1)
        m = jnp.max(logits, axis=1)
        lse = jnp.log(jnp.sum(jnp.exp(logits - m[:, None]), axis=1)) + m
        return jnp.sum(lse - pos) / B

    def orth(sh, sp):
        sh = jax.nn.sigmoid(sh)
        sp = jax.nn.sigmoid(sp)
        sh = sh / jnp.maximum(jnp.linalg.norm(sh, axis=1, keepdims=True), 1e-12)
        sp = sp / jnp.maximum(jnp.linalg.norm(sp, axis=1, keepdims=True), 1e-12)
        return jnp.mean(sh * sp)

    view = len(view_specific)
    c = 0.0
    u = 0.0
    for i in range(view):
        for j in range(i + 1, view):
            c = c + vc(view_specific[i], view_specific[j])
            u = u + ui(view_shared[i], view_specific[i],
                       view_shared[j], view_specific[j])
    o = 0.0
    for i in range(view):
        o = o + orth(view_shared[i], view_specific[i])
    return (c * alphas['contrastive'] + u * alphas['user_inner']
            + o * alphas['orth'])


if __name__ == "__main__":
    VIEW = 3
    BATCH = 8
    HIDDEN = 32
    alphas = {'contrastive': 0.5, 'user_inner': 0.3, 'orth': 0.2}

    key = jax.random.PRNGKey(0)
    keys = jax.random.split(key, 2 * VIEW)
    view_specific = [jax.random.normal(keys[i], (BATCH, HIDDEN), jnp.float32)
                     for i in range(VIEW)]
    view_shared = [jax.random.normal(keys[VIEW + i], (BATCH, HIDDEN), jnp.float32)
                   for i in range(VIEW)]

    loss = all_loss(view_specific, view_shared, alphas)
    loss = jax.block_until_ready(loss)

    ref = _ref_all_loss(view_specific, view_shared, alphas)
    assert jnp.allclose(loss, ref, rtol=2e-3, atol=2e-3), (loss, ref)

    print("KERNEL_OK")
</pallas_src>

<mosaic_0001>
module attributes {stable_mosaic.version = 11 : i64} {
  func.func @_all_loss_kernel(%arg0: i32, %arg1: memref<3x3xi32, #tpu.memory_space<smem>>, %arg2: memref<1x8x32xf32, #tpu.memory_space<vmem>>, %arg3: memref<1x8x32xf32, #tpu.memory_space<vmem>>, %arg4: memref<1x8x32xf32, #tpu.memory_space<vmem>>, %arg5: memref<1x8x32xf32, #tpu.memory_space<vmem>>, %arg6: memref<1x8x32xf32, #tpu.memory_space<vmem>>, %arg7: memref<1x8x32xf32, #tpu.memory_space<vmem>>, %arg8: memref<1x1xf32, #tpu.memory_space<smem>>) attributes {dimension_semantics = [#tpu.dimension_semantics<arbitrary>], iteration_bounds = array<i64: 3>, scalar_prefetch = 1 : i64, scratch_operands = 0 : i64, tpu.core_type = #tpu.core_type<tc>, window_params = [{transform_indices = @transform_0, window_bounds = array<i64: 1, 8, 32>}, {transform_indices = @transform_1, window_bounds = array<i64: 1, 8, 32>}, {transform_indices = @transform_2, window_bounds = array<i64: 1, 8, 32>}, {transform_indices = @transform_3, window_bounds = array<i64: 1, 8, 32>}, {transform_indices = @transform_4, window_bounds = array<i64: 1, 8, 32>}, {transform_indices = @transform_5, window_bounds = array<i64: 1, 8, 32>}, {transform_indices = @transform_6, window_bounds = array<i64: 1, 1>}]} {
    %c0_i32 = arith.constant 0 : i32
    %0 = arith.cmpi eq, %arg0, %c0_i32 : i32
    %1 = arith.extui %0 : i1 to i32
    %c0_i32_0 = arith.constant 0 : i32
    %2 = arith.cmpi ne, %1, %c0_i32_0 : i32
    scf.if %2 {
      %cst_68 = arith.constant 0.000000e+00 : f32
      %c0_69 = arith.constant 0 : index
      %c0_70 = arith.constant 0 : index
      %176 = memref.load %arg8[%c0_69, %c0_70] : memref<1x1xf32, #tpu.memory_space<smem>>
      memref.store %cst_68, %arg8[%c0_69, %c0_70] : memref<1x1xf32, #tpu.memory_space<smem>>
    } else {
    }
    %c0 = arith.constant 0 : index
    %c0_1 = arith.constant 0 : index
    %c0_2 = arith.constant 0 : index
    %3 = vector.load %arg2[%c0, %c0_1, %c0_2] : memref<1x8x32xf32, #tpu.memory_space<vmem>>, vector<1x8x32xf32>
    %4 = vector.shape_cast %3 : vector<1x8x32xf32> to vector<8x32xf32>
    %c0_3 = arith.constant 0 : index
    %c0_4 = arith.constant 0 : index
    %c0_5 = arith.constant 0 : index
    %5 = vector.load %arg3[%c0_3, %c0_4, %c0_5] : memref<1x8x32xf32, #tpu.memory_space<vmem>>, vector<1x8x32xf32>
    %6 = vector.shape_cast %5 : vector<1x8x32xf32> to vector<8x32xf32>
    %c0_6 = arith.constant 0 : index
    %c0_7 = arith.constant 0 : index
    %c0_8 = arith.constant 0 : index
    %7 = vector.load %arg4[%c0_6, %c0_7, %c0_8] : memref<1x8x32xf32, #tpu.memory_space<vmem>>, vector<1x8x32xf32>
    %8 = vector.shape_cast %7 : vector<1x8x32xf32> to vector<8x32xf32>
    %c0_9 = arith.constant 0 : index
    %c0_10 = arith.constant 0 : index
    %c0_11 = arith.constant 0 : index
    %9 = vector.load %arg5[%c0_9, %c0_10, %c0_11] : memref<1x8x32xf32, #tpu.memory_space<vmem>>, vector<1x8x32xf32>
    %10 = vector.shape_cast %9 : vector<1x8x32xf32> to vector<8x32xf32>
    %11 = tpu.transpose %4, [1, 0] : vector<8x32xf32> -> vector<32x8xf32>
    %cst = arith.constant dense<0.000000e+00> : vector<8x8xf32>
    %12 = tpu.matmul %4, %11, %cst {dimension_numbers = #tpu.dot_dimension_numbers<[1], [0], [0], [1], [0, 0, 1, 1], [], []>} : vector<8x32xf32>, vector<32x8xf32>, vector<8x8xf32> -> vector<8x8xf32>
    %cst_12 = arith.constant 2.000000e+00 : f32
    %13 = vector.broadcast %cst_12 : f32 to vector<8x8xf32>
    %14 = arith.mulf %12, %13 : vector<8x8xf32>
    %15 = tpu.transpose %6, [1, 0] : vector<8x32xf32> -> vector<32x8xf32>
    %cst_13 = arith.constant dense<0.000000e+00> : vector<8x8xf32>
    %16 = tpu.matmul %6, %15, %cst_13 {dimension_numbers = #tpu.dot_dimension_numbers<[1], [0], [0], [1], [0, 0, 1, 1], [], []>} : vector<8x32xf32>, vector<32x8xf32>, vector<8x8xf32> -> vector<8x8xf32>
    %cst_14 = arith.constant 2.000000e+00 : f32
    %17 = vector.broadcast %cst_14 : f32 to vector<8x8xf32>
    %18 = arith.mulf %16, %17 : vector<8x8xf32>
    %19 = tpu.transpose %6, [1, 0] : vector<8x32xf32> -> vector<32x8xf32>
    %cst_15 = arith.constant dense<0.000000e+00> : vector<8x8xf32>
    %20 = tpu.matmul %4, %19, %cst_15 {dimension_numbers = #tpu.dot_dimension_numbers<[1], [0], [0], [1], [0, 0, 1, 1], [], []>} : vector<8x32xf32>, vector<32x8xf32>, vector<8x8xf32> -> vector<8x8xf32>
    %cst_16 = arith.constant 2.000000e+00 : f32
    %21 = vector.broadcast %cst_16 : f32 to vector<8x8xf32>
    %22 = arith.mulf %20, %21 : vector<8x8xf32>
    %23 = tpu.transpose %22, [1, 0] : vector<8x8xf32> -> vector<8x8xf32>
    %24 = tpu.iota {dimensions = array<i32: 0>} : vector<8x8xi32>
    %25 = tpu.iota {dimensions = array<i32: 1>} : vector<8x8xi32>
    %26 = arith.cmpi eq, %24, %25 : vector<8x8xi32>
    %cst_17 = arith.constant -1.000000e+30 : f32
    %27 = vector.broadcast %cst_17 : f32 to vector<8x8xf32>
    %28 = arith.select %26, %27, %14 : vector<8x8xi1>, vector<8x8xf32>
    %cst_18 = arith.constant -1.000000e+30 : f32
    %29 = vector.broadcast %cst_18 : f32 to vector<8x8xf32>
    %30 = arith.select %26, %29, %18 : vector<8x8xi1>, vector<8x8xf32>
    %31 = arith.mulf %4, %6 : vector<8x32xf32>
    %cst_19 = arith.constant dense<0.000000e+00> : vector<8xf32>
    %32 = vector.multi_reduction <add>, %31, %cst_19 [1] : vector<8x32xf32> to vector<8xf32>
    %33 = vector.shape_cast %32 : vector<8xf32> to vector<8x1xf32>
    %cst_20 = arith.constant 2.000000e+00 : f32
    %34 = vector.broadcast %cst_20 : f32 to vector<8x1xf32>
    %35 = arith.mulf %33, %34 : vector<8x1xf32>
    %cst_21 = arith.constant dense<0xFF800000> : vector<8xf32>
    %36 = vector.multi_reduction <maximumf>, %28, %cst_21 [1] : vector<8x8xf32> to vector<8xf32>
    %37 = vector.shape_cast %36 : vector<8xf32> to vector<8x1xf32>
    %cst_22 = arith.constant dense<0xFF800000> : vector<8xf32>
    %38 = vector.multi_reduction <maximumf>, %22, %cst_22 [1] : vector<8x8xf32> to vector<8xf32>
    %39 = vector.shape_cast %38 : vector<8xf32> to vector<8x1xf32>
    %40 = arith.maximumf %37, %39 : vector<8x1xf32>
    %41 = vector.broadcast %40 : vector<8x1xf32> to vector<8x8xf32>
    %42 = arith.subf %28, %41 : vector<8x8xf32>
    %43 = math.exp %42 : vector<8x8xf32>
    %cst_23 = arith.constant dense<0.000000e+00> : vector<8xf32>
    %44 = vector.multi_reduction <add>, %43, %cst_23 [1] : vector<8x8xf32> to vector<8xf32>
    %45 = vector.shape_cast %44 : vector<8xf32> to vector<8x1xf32>
    %46 = vector.broadcast %40 : vector<8x1xf32> to vector<8x8xf32>
    %47 = arith.subf %22, %46 : vector<8x8xf32>
    %48 = math.exp %47 : vector<8x8xf32>
    %cst_24 = arith.constant dense<0.000000e+00> : vector<8xf32>
    %49 = vector.multi_reduction <add>, %48, %cst_24 [1] : vector<8x8xf32> to vector<8xf32>
    %50 = vector.shape_cast %49 : vector<8xf32> to vector<8x1xf32>
    %51 = arith.addf %45, %50 : vector<8x1xf32>
    %52 = math.log %51 : vector<8x1xf32>
    %53 = arith.addf %52, %40 : vector<8x1xf32>
    %cst_25 = arith.constant dense<0xFF800000> : vector<8xf32>
    %54 = vector.multi_reduction <maximumf>, %23, %cst_25 [1] : vector<8x8xf32> to vector<8xf32>
    %55 = vector.shape_cast %54 : vector<8xf32> to vector<8x1xf32>
    %cst_26 = arith.constant dense<0xFF800000> : vector<8xf32>
    %56 = vector.multi_reduction <maximumf>, %30, %cst_26 [1] : vector<8x8xf32> to vector<8xf32>
    %57 = vector.shape_cast %56 : vector<8xf32> to vector<8x1xf32>
    %58 = arith.maximumf %55, %57 : vector<8x1xf32>
    %59 = vector.broadcast %58 : vector<8x1xf32> to vector<8x8xf32>
    %60 = arith.subf %23, %59 : vector<8x8xf32>
    %61 = math.exp %60 : vector<8x8xf32>
    %cst_27 = arith.constant dense<0.000000e+00> : vector<8xf32>
    %62 = vector.multi_reduction <add>, %61, %cst_27 [1] : vector<8x8xf32> to vector<8xf32>
    %63 = vector.shape_cast %62 : vector<8xf32> to vector<8x1xf32>
    %64 = vector.broadcast %58 : vector<8x1xf32> to vector<8x8xf32>
    %65 = arith.subf %30, %64 : vector<8x8xf32>
    %66 = math.exp %65 : vector<8x8xf32>
    %cst_28 = arith.constant dense<0.000000e+00> : vector<8xf32>
    %67 = vector.multi_reduction <add>, %66, %cst_28 [1] : vector<8x8xf32> to vector<8xf32>
    %68 = vector.shape_cast %67 : vector<8xf32> to vector<8x1xf32>
    %69 = arith.addf %63, %68 : vector<8x1xf32>
    %70 = math.log %69 : vector<8x1xf32>
    %71 = arith.addf %70, %58 : vector<8x1xf32>
    %72 = arith.subf %53, %35 : vector<8x1xf32>
    %73 = vector.shape_cast %72 : vector<8x1xf32> to vector<1x8x1xf32>
    %cst_29 = arith.constant dense<0.000000e+00> : vector<1xf32>
    %74 = vector.multi_reduction <add>, %73, %cst_29 [1, 2] : vector<1x8x1xf32> to vector<1xf32>
    %75 = vector.shape_cast %74 : vector<1xf32> to vector<1x1x1xf32>
    %76 = vector.extract %75[0, 0, 0] : f32 from vector<1x1x1xf32>
    %77 = arith.subf %71, %35 : vector<8x1xf32>
    %78 = vector.shape_cast %77 : vector<8x1xf32> to vector<1x8x1xf32>
    %cst_30 = arith.constant dense<0.000000e+00> : vector<1xf32>
    %79 = vector.multi_reduction <add>, %78, %cst_30 [1, 2] : vector<1x8x1xf32> to vector<1xf32>
    %80 = vector.shape_cast %79 : vector<1xf32> to vector<1x1x1xf32>
    %81 = vector.extract %80[0, 0, 0] : f32 from vector<1x1x1xf32>
    %82 = arith.addf %76, %81 : f32
    %cst_31 = arith.constant 6.250000e-02 : f32
    %83 = arith.mulf %82, %cst_31 : f32
    %84 = arith.mulf %8, %10 : vector<8x32xf32>
    %cst_32 = arith.constant dense<0.000000e+00> : vector<8xf32>
    %85 = vector.multi_reduction <add>, %84, %cst_32 [1] : vector<8x32xf32> to vector<8xf32>
    %86 = vector.shape_cast %85 : vector<8xf32> to vector<8x1xf32>
    %cst_33 = arith.constant 2.000000e+00 : f32
    %87 = vector.broadcast %cst_33 : f32 to vector<8x1xf32>
    %88 = arith.mulf %86, %87 : vector<8x1xf32>
    %89 = arith.mulf %8, %6 : vector<8x32xf32>
    %cst_34 = arith.constant dense<0.000000e+00> : vector<8xf32>
    %90 = vector.multi_reduction <add>, %89, %cst_34 [1] : vector<8x32xf32> to vector<8xf32>
    %91 = vector.shape_cast %90 : vector<8xf32> to vector<8x1xf32>
    %cst_35 = arith.constant 2.000000e+00 : f32
    %92 = vector.broadcast %cst_35 : f32 to vector<8x1xf32>
    %93 = arith.mulf %91, %92 : vector<8x1xf32>
    %94 = arith.mulf %4, %10 : vector<8x32xf32>
    %cst_36 = arith.constant dense<0.000000e+00> : vector<8xf32>
    %95 = vector.multi_reduction <add>, %94, %cst_36 [1] : vector<8x32xf32> to vector<8xf32>
    %96 = vector.shape_cast %95 : vector<8xf32> to vector<8x1xf32>
    %cst_37 = arith.constant 2.000000e+00 : f32
    %97 = vector.broadcast %cst_37 : f32 to vector<8x1xf32>
    %98 = arith.mulf %96, %97 : vector<8x1xf32>
    %99 = arith.mulf %4, %6 : vector<8x32xf32>
    %cst_38 = arith.constant dense<0.000000e+00> : vector<8xf32>
    %100 = vector.multi_reduction <add>, %99, %cst_38 [1] : vector<8x32xf32> to vector<8xf32>
    %101 = vector.shape_cast %100 : vector<8xf32> to vector<8x1xf32>
    %cst_39 = arith.constant 2.000000e+00 : f32
    %102 = vector.broadcast %cst_39 : f32 to vector<8x1xf32>
    %103 = arith.mulf %101, %102 : vector<8x1xf32>
    %104 = arith.maximumf %88, %93 : vector<8x1xf32>
    %105 = arith.maximumf %98, %103 : vector<8x1xf32>
    %106 = arith.maximumf %104, %105 : vector<8x1xf32>
    %107 = arith.subf %88, %106 : vector<8x1xf32>
    %108 = math.exp %107 : vector<8x1xf32>
    %109 = arith.subf %93, %106 : vector<8x1xf32>
    %110 = math.exp %109 : vector<8x1xf32>
    %111 = arith.addf %108, %110 : vector<8x1xf32>
    %112 = arith.subf %98, %106 : vector<8x1xf32>
    %113 = math.exp %112 : vector<8x1xf32>
    %114 = arith.addf %111, %113 : vector<8x1xf32>
    %115 = arith.subf %103, %106 : vector<8x1xf32>
    %116 = math.exp %115 : vector<8x1xf32>
    %117 = arith.addf %114, %116 : vector<8x1xf32>
    %118 = math.log %117 : vector<8x1xf32>
    %119 = arith.addf %118, %106 : vector<8x1xf32>
    %120 = arith.subf %119, %88 : vector<8x1xf32>
    %121 = vector.shape_cast %120 : vector<8x1xf32> to vector<1x8x1xf32>
    %cst_40 = arith.constant dense<0.000000e+00> : vector<1xf32>
    %122 = vector.multi_reduction <add>, %121, %cst_40 [1, 2] : vector<1x8x1xf32> to vector<1xf32>
    %123 = vector.shape_cast %122 : vector<1xf32> to vector<1x1x1xf32>
    %124 = vector.extract %123[0, 0, 0] : f32 from vector<1x1x1xf32>
    %cst_41 = arith.constant 1.250000e-01 : f32
    %125 = arith.mulf %124, %cst_41 : f32
    %c0_42 = arith.constant 0 : index
    %c0_43 = arith.constant 0 : index
    %c0_44 = arith.constant 0 : index
    %126 = vector.load %arg6[%c0_42, %c0_43, %c0_44] : memref<1x8x32xf32, #tpu.memory_space<vmem>>, vector<1x8x32xf32>
    %127 = vector.shape_cast %126 : vector<1x8x32xf32> to vector<8x32xf32>
    %128 = arith.negf %127 : vector<8x32xf32>
    %129 = math.exp %128 : vector<8x32xf32>
    %cst_45 = arith.constant 1.000000e+00 : f32
    %130 = vector.broadcast %cst_45 : f32 to vector<8x32xf32>
    %131 = arith.addf %130, %129 : vector<8x32xf32>
    %132 = arith.divf %130, %131 : vector<8x32xf32>
    %c0_46 = arith.constant 0 : index
    %c0_47 = arith.constant 0 : index
    %c0_48 = arith.constant 0 : index
    %133 = vector.load %arg7[%c0_46, %c0_47, %c0_48] : memref<1x8x32xf32, #tpu.memory_space<vmem>>, vector<1x8x32xf32>
    %134 = vector.shape_cast %133 : vector<1x8x32xf32> to vector<8x32xf32>
    %135 = arith.negf %134 : vector<8x32xf32>
    %136 = math.exp %135 : vector<8x32xf32>
    %cst_49 = arith.constant 1.000000e+00 : f32
    %137 = vector.broadcast %cst_49 : f32 to vector<8x32xf32>
    %138 = arith.addf %137, %136 : vector<8x32xf32>
    %139 = arith.divf %137, %138 : vector<8x32xf32>
    %140 = arith.mulf %132, %132 : vector<8x32xf32>
    %cst_50 = arith.constant dense<0.000000e+00> : vector<8xf32>
    %141 = vector.multi_reduction <add>, %140, %cst_50 [1] : vector<8x32xf32> to vector<8xf32>
    %142 = vector.shape_cast %141 : vector<8xf32> to vector<8x1xf32>
    %cst_51 = arith.constant 1.000000e-24 : f32
    %143 = vector.broadcast %cst_51 : f32 to vector<8x1xf32>
    %144 = arith.maximumf %142, %143 : vector<8x1xf32>
    %145 = math.rsqrt %144 : vector<8x1xf32>
    %146 = arith.mulf %139, %139 : vector<8x32xf32>
    %cst_52 = arith.constant dense<0.000000e+00> : vector<8xf32>
    %147 = vector.multi_reduction <add>, %146, %cst_52 [1] : vector<8x32xf32> to vector<8xf32>
    %148 = vector.shape_cast %147 : vector<8xf32> to vector<8x1xf32>
    %cst_53 = arith.constant 1.000000e-24 : f32
    %149 = vector.broadcast %cst_53 : f32 to vector<8x1xf32>
    %150 = arith.maximumf %148, %149 : vector<8x1xf32>
    %151 = math.rsqrt %150 : vector<8x1xf32>
    %152 = vector.broadcast %145 : vector<8x1xf32> to vector<8x32xf32>
    %153 = arith.mulf %132, %152 : vector<8x32xf32>
    %154 = vector.broadcast %151 : vector<8x1xf32> to vector<8x32xf32>
    %155 = arith.mulf %139, %154 : vector<8x32xf32>
    %156 = arith.mulf %153, %155 : vector<8x32xf32>
    %157 = vector.shape_cast %156 : vector<8x32xf32> to vector<1x8x32xf32>
    %cst_54 = arith.constant dense<0.000000e+00> : vector<1xf32>
    %158 = vector.multi_reduction <add>, %157, %cst_54 [1, 2] : vector<1x8x32xf32> to vector<1xf32>
    %159 = vector.shape_cast %158 : vector<1xf32> to vector<1x1x1xf32>
    %160 = vector.extract %159[0, 0, 0] : f32 from vector<1x1x1xf32>
    %cst_55 = arith.constant 3.906250e-03 : f32
    %161 = arith.mulf %160, %cst_55 : f32
    %c3_i32 = arith.constant 3 : i32
    %162 = arith.cmpi slt, %arg0, %c3_i32 : i32
    %cst_56 = arith.constant 1.000000e+00 : f32
    %cst_57 = arith.constant 0.000000e+00 : f32
    %163 = arith.select %162, %cst_56, %cst_57 : f32
    %c3_i32_58 = arith.constant 3 : i32
    %164 = arith.cmpi slt, %arg0, %c3_i32_58 : i32
    %cst_59 = arith.constant 1.000000e+00 : f32
    %cst_60 = arith.constant 0.000000e+00 : f32
    %165 = arith.select %164, %cst_59, %cst_60 : f32
    %cst_61 = arith.constant 5.000000e-01 : f32
    %166 = arith.mulf %cst_61, %83 : f32
    %cst_62 = arith.constant 3.000000e-01 : f32
    %167 = arith.mulf %cst_62, %125 : f32
    %168 = arith.addf %166, %167 : f32
    %169 = arith.mulf %163, %168 : f32
    %cst_63 = arith.constant 2.000000e-01 : f32
    %170 = arith.mulf %165, %cst_63 : f32
    %171 = arith.mulf %170, %161 : f32
    %172 = arith.addf %169, %171 : f32
    %c0_64 = arith.constant 0 : index
    %c0_65 = arith.constant 0 : index
    %173 = memref.load %arg8[%c0_64, %c0_65] : memref<1x1xf32, #tpu.memory_space<smem>>
    %174 = arith.addf %173, %172 : f32
    %c0_66 = arith.constant 0 : index
    %c0_67 = arith.constant 0 : index
    %175 = memref.load %arg8[%c0_66, %c0_67] : memref<1x1xf32, #tpu.memory_space<smem>>
    memref.store %174, %arg8[%c0_66, %c0_67] : memref<1x1xf32, #tpu.memory_space<smem>>
    return
  }
  func.func @transform_0(%arg0: i32, %arg1: memref<3x3xi32, #tpu.memory_space<smem>>) -> (i32, i32, i32) {
    %c0 = arith.constant 0 : index
    %0 = arith.index_cast %arg0 : i32 to index
    %1 = memref.load %arg1[%c0, %0] : memref<3x3xi32, #tpu.memory_space<smem>>
    %c0_i32 = arith.constant 0 : i32
    %c0_i32_0 = arith.constant 0 : i32
    %c0_i32_1 = arith.constant 0 : i32
    return %1, %c0_i32, %c0_i32_0 : i32, i32, i32
  }
  func.func @transform_1(%arg0: i32, %arg1: memref<3x3xi32, #tpu.memory_space<smem>>) -> (i32, i32, i32) {
    %c1 = arith.constant 1 : index
    %0 = arith.index_cast %arg0 : i32 to index
    %1 = memref.load %arg1[%c1, %0] : memref<3x3xi32, #tpu.memory_space<smem>>
    %c0_i32 = arith.constant 0 : i32
    %c0_i32_0 = arith.constant 0 : i32
    %c0_i32_1 = arith.constant 0 : i32
    return %1, %c0_i32, %c0_i32_0 : i32, i32, i32
  }
  func.func @transform_2(%arg0: i32, %arg1: memref<3x3xi32, #tpu.memory_space<smem>>) -> (i32, i32, i32) {
    %c0 = arith.constant 0 : index
    %0 = arith.index_cast %arg0 : i32 to index
    %1 = memref.load %arg1[%c0, %0] : memref<3x3xi32, #tpu.memory_space<smem>>
    %c0_i32 = arith.constant 0 : i32
    %c0_i32_0 = arith.constant 0 : i32
    %c0_i32_1 = arith.constant 0 : i32
    return %1, %c0_i32, %c0_i32_0 : i32, i32, i32
  }
  func.func @transform_3(%arg0: i32, %arg1: memref<3x3xi32, #tpu.memory_space<smem>>) -> (i32, i32, i32) {
    %c1 = arith.constant 1 : index
    %0 = arith.index_cast %arg0 : i32 to index
    %1 = memref.load %arg1[%c1, %0] : memref<3x3xi32, #tpu.memory_space<smem>>
    %c0_i32 = arith.constant 0 : i32
    %c0_i32_0 = arith.constant 0 : i32
    %c0_i32_1 = arith.constant 0 : i32
    return %1, %c0_i32, %c0_i32_0 : i32, i32, i32
  }
  func.func @transform_4(%arg0: i32, %arg1: memref<3x3xi32, #tpu.memory_space<smem>>) -> (i32, i32, i32) {
    %c2 = arith.constant 2 : index
    %0 = arith.index_cast %arg0 : i32 to index
    %1 = memref.load %arg1[%c2, %0] : memref<3x3xi32, #tpu.memory_space<smem>>
    %c0_i32 = arith.constant 0 : i32
    %c0_i32_0 = arith.constant 0 : i32
    %c0_i32_1 = arith.constant 0 : i32
    return %1, %c0_i32, %c0_i32_0 : i32, i32, i32
  }
  func.func @transform_5(%arg0: i32, %arg1: memref<3x3xi32, #tpu.memory_space<smem>>) -> (i32, i32, i32) {
    %c2 = arith.constant 2 : index
    %0 = arith.index_cast %arg0 : i32 to index
    %1 = memref.load %arg1[%c2, %0] : memref<3x3xi32, #tpu.memory_space<smem>>
    %c0_i32 = arith.constant 0 : i32
    %c0_i32_0 = arith.constant 0 : i32
    %c0_i32_1 = arith.constant 0 : i32
    return %1, %c0_i32, %c0_i32_0 : i32, i32, i32
  }
  func.func @transform_6(%arg0: i32, %arg1: memref<3x3xi32, #tpu.memory_space<smem>>) -> (i32, i32) {
    %c0_i32 = arith.constant 0 : i32
    %c0_i32_0 = arith.constant 0 : i32
    %c0_i32_1 = arith.constant 0 : i32
    return %c0_i32, %c0_i32_0 : i32, i32
  }
}

</mosaic_0001>

<bundles_post_ra>
// kernel: tpu_custom_call.1
= control target key start
LH: loop header
LB: loop body
LE: loop exit
PB: predicated region body
PF: predicated region fallthrough
CT: control target
= control target key end

     0   :  { %s2794_s0 = inlined_call_operand.hbm [shape: s32[3,3], index: 0, kind: input, shape index: {}]   ;;  %s2795_s1 = inlined_call_operand.hbm [shape: f32[3,8,32], index: 1, kind: input, shape index: {}]   ;;  %s2796_s2 = inlined_call_operand.hbm [shape: f32[3,8,32], index: 2, kind: input, shape index: {}]   ;;  %s2797_s3 = inlined_call_operand.hbm [shape: f32[3,8,32], index: 3, kind: input, shape index: {}]   ;;  %s2798_s4 = inlined_call_operand.hbm [shape: f32[3,8,32], index: 4, kind: input, shape index: {}]   ;;  %s2799_s5 = inlined_call_operand.hbm [shape: f32[3,8,32], index: 5, kind: input, shape index: {}]   ;;  %s2800_s6 = inlined_call_operand.hbm [shape: f32[3,8,32], index: 6, kind: input, shape index: {}]   ;;  %s2801_s7 = inlined_call_operand.hbm [shape: f32[1,1], index: 7, kind: output, shape index: {}]  }
   0x1   :  { %2835 = sst [smem:[#allocation57_spill]] %s2795_s1  ;;  %s1543_s26 = scalar_lea.hbm %s2794_s0, 64 }
   0x2   :  { %2836 = sst [smem:[#allocation58_spill]] %s2796_s2  ;;  %p1544_p0 = scmp.ne.s32.totalorder %s2794_s0, %s1543_s26 }
   0x3   :  { %2837 = sst [smem:[#allocation59_spill]] %s2797_s3  ;;  %p1547_p1 = scmp.lt.u32.totalorder %s1543_s26, %s2794_s0 }
   0x4   :  { %2838 = sst [smem:[#allocation60_spill]] %s2798_s4 }
   0x5   :  { %2839 = sst [smem:[#allocation61_spill]] %s2799_s5  ;;  %p1549_p2 = pnand %p1547_p1, %p1544_p0 }
   0x6   :  { %2840 = sst [smem:[#allocation62_spill]] %s2800_s6 }
   0x7   :  { %2841 = sst [smem:[#allocation63_spill]] %s2801_s7 }
   0x8   :  { %1552 = shalt.err (!%p1549_p2)  }
   0x9   :  { %s1927_s8 = smov [#allocation3]  }
   0xa   :  { %13 = dma.hbm_to_smem %s2794_s0, 64, %s1927_s8, [#allocation2] }
   0xb   :  { %1821 = dma.done.wait [#allocation2], 64 }
   0xc   :  { %1822 = vsyncadd [#allocation2], 4294967232 }
   0xd   :  { %15 = sfence }
   0xe   :  { %16 = vsyncpa [#allocation5], 0 }
   0xf   :  { %18 = vsyncpa [#allocation5 + $0x1], 0 }
  0x10   :  { %19 = vsyncpa [#allocation8], 0 }
  0x11   :  { %21 = vsyncpa [#allocation8 + $0x1], 0 }
  0x12   :  { %22 = vsyncpa [#allocation11], 0 }
  0x13   :  { %24 = vsyncpa [#allocation11 + $0x1], 0 }
  0x14   :  { %25 = vsyncpa [#allocation14], 0 }
  0x15   :  { %27 = vsyncpa [#allocation14 + $0x1], 0 }
  0x16   :  { %28 = vsyncpa [#allocation6], 0  ;;  %s1990_s11 = smov 0   ;;  %s1992_s12 = smov 0  }
  0x17   :  { %s1994_s13 = smov 0   ;;  %s1996_s14 = smov 0  }
  0x18   :  { %s1998_s0 = smov 0   ;;  %s2000_s15 = smov 0  }
  0x19   :  { %s2002_s16 = smov 0   ;;  %s2004_s17 = smov 0  }
  0x1a   :  { %s2006_s18 = smov 0   ;;  %s2008_s19 = smov 0  }
  0x1b   :  { %s2010_s20 = smov 0   ;;  %s2012_s21 = smov 0  }
  0x1c   :  { %s2014_s22 = smov 0   ;;  %s2016_s23 = smov 0  }
  0x1d   :  { %s2018_s24 = smov 0   ;;  %s2020_s25 = smov 0  }
  0x1e   :  { %s2022_s26 = smov 0   ;;  %s2024_s27 = smov 0  }
  0x1f   :  { %s2026_s28 = smov 0  }
  0x20 LB: > { %2842 = sst [smem:[#allocation36_spill]] %s1853_s11  ;;  %s2084_s29 = sadd.s32 1, %s1925_s28   ;;  %s1925_s28 = sphi %s2026_s28, %s2969_s28   ;;  %s1921_s27 = sphi %s2024_s27, %s2961_s27   ;;  %s1917_s26 = sphi %s2022_s26, %s2968_s26   ;;  %s1913_s25 = sphi %s2020_s25, %s2967_s25   ;;  %s1909_s24 = sphi %s2018_s24, %s2959_s24   ;;  %s1905_s23 = sphi %s2016_s23, %s2958_s23   ;;  %s1901_s22 = sphi %s2014_s22, %s2957_s22   ;;  %s1897_s21 = sphi %s2012_s21, %s2966_s21   ;;  %s1893_s20 = sphi %s2010_s20, %s2965_s20   ;;  %s1889_s19 = sphi %s2008_s19, %s2964_s19   ;;  %s1885_s18 = sphi %s2006_s18, %s2954_s18   ;;  %s1881_s17 = sphi %s2004_s17, %s2953_s17   ;;  %s1877_s16 = sphi %s2002_s16, %s2952_s16   ;;  %s1873_s15 = sphi %s2000_s15, %s2963_s15   ;;  %s1869_s0 = sphi %s1998_s0, %s2951_s0   ;;  %s1865_s14 = sphi %s1996_s14, %s2950_s14   ;;  %s1861_s13 = sphi %s1994_s13, %s2962_s13   ;;  %s1857_s12 = sphi %s1992_s12, %s2949_s12   ;;  %s1853_s11 = sphi %s1990_s11, %s2948_s11  }
  0x21   : > { %2843 = sst [smem:[#allocation37_spill]] %s1857_s12  ;;  %s2087_s30 = sadd.s32 4294967295, %s1925_s28  }
  0x22   : > { %2844 = sst [smem:[#allocation38_spill]] %s1861_s13  ;;  %p2818_p3 = scmp.eq.s32.totalorder %s1925_s28, 0 }
  0x23   : > { %2845 = sst [smem:[#allocation39_spill]] %s1865_s14  ;;  %s66_s8 = sshra.s32 %s1925_s28, 7 }
  0x24   : > { %2846 = sst [smem:[#allocation40_spill]] %s1869_s0  ;;  %s71_s9 = sand.u32 127, %s1925_s28 }
  0x25   : > { %2847 = sst [smem:[#allocation41_spill]] %s1873_s15  ;;  %s1234_s10 = sshll.u32 %s66_s8, 7 }
  0x26   : > { %2848 = sst [smem:[#allocation42_spill]] %s1881_s17  ;;  %s74_s7 = sshra.s32 %s2084_s29, 7 }
  0x27   : > { %2849 = sst [smem:[#allocation43_spill]] %s1885_s18  ;;  %s1235_s6 = sadd.s32 128, %s1234_s10 }
  0x28   : > { %2850 = sst [smem:[#allocation44_spill]] %s1897_s21  ;;  %s2093_s5 = sshll.u32 %s74_s7, 7 }
  0x29   : > { %2851 = sst [smem:[#allocation45_spill]] %s1905_s23  ;;  %s2095_s11 = sadd.s32 %s1235_s6, %s71_s9 }
  0x2a   : > { %2852 = sst [smem:[#allocation46_spill]] %s1909_s24  ;;  %s1237_s12 = sadd.s32 128, %s2093_s5 }
  0x2b   : > { %2853 = sst [smem:[#allocation47_spill]] %s1921_s27  ;;  %s2811_s14 = sand.u32 127, %s2084_s29 }
  0x2c   : > { %2854 = sst [smem:[#allocation48_spill]] %s2093_s5  ;;  %p2820_p4 = scmp.eq.s32.totalorder %s2087_s30, 0 }
  0x2d   : > { %s73_s13 = sld [smem:[#allocation3 + %s2095_s11]]  ;;  %s80_s8 = sadd.s32 %s1237_s12, %s2811_s14 }
  0x2e   : > { %s81_s3 = sld [smem:[#allocation3 + %s80_s8]]  ;;  %p92_p5 = scmp.ne.s32.totalorder %s1909_s24, %s1905_s23 }
  0x2f   : > { %s85_s7 = sadd.s32 1, %s1909_s24  ;;  %p98_p6 = scmp.ne.s32.totalorder %s1905_s23, %s1901_s22 }
  0x30   : > { %s2108_s6 = sld [smem:[#allocation3 + %s2095_s11]]  ;;  %s1243_s15 = sadd.s32 256, %s1234_s10 }
  0x31   : > { %p2112_p7 = por %p98_p6, %p2820_p4  ;;  %s2116_s5 = sadd.s32 %s1243_s15, %s71_s9 }
  0x32   : > { %2857 = sst [smem:[#allocation50_spill]] %s2116_s5  ;;  %p2120_p8 = por %p92_p5, %p2818_p3 }
  0x33   : > { %s2855_s0 = scalar_select %p2112_p7, 1, 0 }
  0x34   : > { %s2125_s22 = sld [smem:[#allocation3 + %s2116_s5]]  ;;  %p2819_p9 = scmp.lt.s32.totalorder %s1925_s28, 3 }
  0x35   : > { %2856 = sst [smem:[#allocation49_spill]] %s2855_s0  ;;  %s82_s10 = ssub.s32 %s73_s13, %s81_s3 }
  0x36   : > { %p83_p10 = scmp.eq.s32.totalorder %s82_s10, 0  ;;  %s318_s0 = sand.u32 1, %s1909_s24  }
  0x37   : > { %p2134_p11 = pnand %p2819_p9, %p2120_p8  ;;  %s1200_s23 = sshll.u32 %s318_s0, 3 }
  0x38   : > { %s2139_s9 = scalar_select %p83_p10, %s1909_s24, %s85_s7  }
  0x39   : > { %p1214_p12 = scmp.ge.s32.totalorder %s1925_s28, 1  ;;  %s320_s10 = scalar_lea.vmem [#allocation7], %s1200_s23 }
  0x3a   : > { %2859 = sst [smem:[#allocation51_spill]] %s2125_s22  ;;  %s335_s14 = sshll.u32 %s320_s10, 4  ;;  %s2152_s14 = int_to_ptr.vmem [resolvable:$true] %s335_s14 }
  0x3b   : > { %2861 = sst [smem:[#allocation52_spill]] %s2139_s9  ;;  %p437_p13 = scmp.lt.s32.totalorder %s1925_s28, 4 }
  0x3c   : > { %s1290_s3 = scalar_select %p2120_p8, [#allocation3], [#allocation17] }
  0x3d   : > { %s1291_s13 = scalar_select %p2120_p8, %s2095_s11, 0 }
  0x3e   : > { %s2971_s3 = smov (!%p2819_p9, %s1290_s3), [#allocation23]  ;;  %p2154_p0 = pnand %p1214_p12, %p437_p13 }
  0x3f   : > { %s2973_s13 = smov (!%p2819_p9, %s1291_s13), 0  ;;  %s2158_s12 = sld [smem:[#allocation3 + %s80_s8]] }
  0x40   : > { %s328_s7 = sld [smem:[%s2971_s3 + %s2973_s13]]  ;;  %p162_p1 = scmp.ne.s32.totalorder %s1885_s18, %s1881_s17 }
  0x41   : > { %s2862_s0 = scalar_select %p2154_p0, 1, 0 }
  0x42   : > { %s2863_s2 = sld [smem:[#allocation58_spill]]  ;;  %p2172_p5 = por %p162_p1, %p2818_p3 }
  0x43   : > { %s2865_s8 = sand.u32 1, %s1925_s28   ;;  %p1555_p8 = pneg %p2134_p11 }
  0x44   : > { %s2178_s13 = scalar_lea.sflag [#allocation8], %s2865_s8 }
  0x46   : > { %s1202_s24 = sshll.u32 %s328_s7, 7 }
  0x48   : > { %s2168_s23 = scalar_lea.hbm %s2863_s2, %s1202_s24  ;;  %s1558_s22 = scalar_lea.hbm %s2863_s2, 384 }
  0x49   : > { %s1553_s10 = scalar_lea.hbm %s2168_s23, 128  ;;  %p1559_p13 = scmp.lt.u32.totalorder %s2168_s23, %s2863_s2 }
  0x4a   : > { %p1554_p6 = scmp.ne.s32.totalorder %s2168_s23, %s1553_s10  ;;  %p1560_p1 = scmp.lt.u32.totalorder %s1558_s22, %s1553_s10 }
  0x4b   : > { %p1562_p9 = scmp.lt.u32.totalorder %s1553_s10, %s2168_s23 }
  0x4c   : > { %p1556_p10 = pnand %p1555_p8, %p1554_p6  ;;  %p1561_p3 = por %p1560_p1, %p1559_p13 }
  0x4e   : > { %p1557_p12 = pneg %p1556_p10  ;;  %p1563_p2 = por %p1562_p9, %p1561_p3 }
  0x50   : > { %p1564_p4 = pnand %p1563_p2, %p1557_p12 }
  0x52   : > { %1567 = shalt.err (!%p1564_p4)
}
  0x53   : > { %s1568_s8 = scalar_lea.vmem %s2152_s14, 128  ;;  %s1928_s5 = smov [#allocation7]  }
  0x54   : > { %p1569_p6 = scmp.ne.s32.totalorder %s2152_s14, %s1568_s8  ;;  %s1573_s24 = sshll.u32 %s1928_s5, 4  ;;  %s1574_s24 = int_to_ptr.vmem [resolvable:$false] %s1573_s24 }
  0x55   : > { %s1575_s9 = scalar_lea.vmem %s1574_s24, 256  ;;  %p1576_p0 = scmp.lt.s32.totalorder %s2152_s14, %s1574_s24 }
  0x56   : > { %p1571_p10 = pnand %p1569_p6, %p1555_p8  ;;  %p1577_p13 = scmp.lt.s32.totalorder %s1575_s9, %s1568_s8 }
  0x58   : > { %p1572_p7 = pneg %p1571_p10  ;;  %p1578_p1 = por %p1577_p13, %p1576_p0 }
  0x5a   : > { %p1579_p3 = pnand %p1578_p1, %p1572_p7 }
  0x5c   : > { %1582 = shalt.err (!%p1579_p3)
}
  0x5d   : > { %1327 = dma.hbm_to_vmem [thread:$0]  (!%p2134_p11), %s2168_s23, 128, %s2152_s14, %s2178_s13  }
  0x5e   : > { %p2866_p4 = scmp.eq.s32.totalorder %s2087_s30, 0  ;;  %p2867_p7 = scmp.ne.s32.totalorder %s1881_s17, %s1877_s16 }
  0x5f   : > { %s152_s10 = ssub.s32 %s2108_s6, %s2158_s12  ;;  %s363_s22 = sand.u32 1, %s1885_s18  }
  0x60   : > { %p2211_p9 = por %p2867_p7, %p2866_p4  ;;  %p153_p0 = scmp.eq.s32.totalorder %s152_s10, 0 }
  0x61   : > { %s1205_s7 = sshll.u32 %s363_s22, 3  ;;  %p2870_p2 = scmp.lt.s32.totalorder %s1925_s28, 3 }
  0x62   : > { %s2868_s15 = scalar_select %p2211_p9, 1, 0 }
  0x63   : > { %p2222_p11 = pnand %p2870_p2, %p2172_p5  ;;  %s2872_s16 = sadd.s32 1, %s1885_s18 }
  0x64   : > { %2869 = sst [smem:[#allocation53_spill]] %s2868_s15  ;;  %s2975_s11 = smov (!%p2172_p5, %s2095_s11), 0 }
  0x65   : > { %s2229_s23 = scalar_select %p153_p0, %s1885_s18, %s2872_s16  }
  0x66   : > { %s1296_s6 = scalar_select %p2172_p5, [#allocation3], [#allocation19] }
  0x67   : > { %2873 = sst [smem:[#allocation54_spill]] %s2229_s23  ;;  %p2874_p8 = pmov %p2870_p2 }
  0x68   : > { %p2875_p12 = pmov %p2870_p2  ;;  %s365_s12 = scalar_lea.vmem [#allocation10], %s1205_s7 }
  0x69   : > { %s2977_s6 = smov (!%p2874_p8, %s1296_s6), [#allocation25]  ;;  %s380_s8 = sshll.u32 %s365_s12, 4  ;;  %s2240_s8 = int_to_ptr.vmem [resolvable:$true] %s380_s8 }
  0x6a   : > { %s2979_s11 = smov (!%p2875_p12, %s2975_s11), 0  ;;  %s2243_s24 = sld [smem:[#allocation3 + %s1925_s28]] }
  0x6b   : > { %s373_s5 = sld [smem:[%s2977_s6 + %s2979_s11]]  ;;  %p50_p6 = scmp.ne.s32.totalorder %s1921_s27, %s1917_s26 }
  0x6c   : > { %s2246_s9 = sld [smem:[#allocation3 + %s2084_s29]]  ;;  %p2877_p5 = scmp.eq.s32.totalorder %s1925_s28, 0 }
  0x6d   : > { %s2876_s4 = sld [smem:[#allocation60_spill]]  ;;  %s2879_s7 = sand.u32 1, %s1925_s28  }
  0x6e   : > { %p2260_p13 = por %p2877_p5, %p50_p6  ;;  %s2266_s6 = scalar_lea.sflag [#allocation11], %s2879_s7 }
  0x6f   : > { %p1585_p3 = pneg %p2222_p11 }
  0x71   : > { %s1207_s3 = sshll.u32 %s373_s5, 7 }
  0x73   : > { %s2256_s2 = scalar_lea.hbm %s2876_s4, %s1207_s3  ;;  %s1588_s22 = scalar_lea.hbm %s2876_s4, 384 }
  0x74   : > { %s1583_s12 = scalar_lea.hbm %s2256_s2, 128  ;;  %p1589_p0 = scmp.lt.u32.totalorder %s2256_s2, %s2876_s4 }
  0x75   : > { %p1584_p1 = scmp.ne.s32.totalorder %s2256_s2, %s1583_s12  ;;  %p1590_p2 = scmp.lt.u32.totalorder %s1588_s22, %s1583_s12 }
  0x76   : > { %p1592_p12 = scmp.lt.u32.totalorder %s1583_s12, %s2256_s2 }
  0x77   : > { %p1586_p4 = pnand %p1585_p3, %p1584_p1  ;;  %p1591_p8 = por %p1590_p2, %p1589_p0 }
  0x79   : > { %p1587_p7 = pneg %p1586_p4  ;;  %p1593_p6 = por %p1592_p12, %p1591_p8 }
  0x7b   : > { %p1594_p5 = pnand %p1593_p6, %p1587_p7 }
  0x7d   : > { %1597 = shalt.err (!%p1594_p5)
}
  0x7e   : > { %s1598_s7 = scalar_lea.vmem %s2240_s8, 128  ;;  %s1929_s5 = smov [#allocation10]  }
  0x7f   : > { %p1599_p1 = scmp.ne.s32.totalorder %s2240_s8, %s1598_s7  ;;  %s1603_s3 = sshll.u32 %s1929_s5, 4  ;;  %s1604_s3 = int_to_ptr.vmem [resolvable:$false] %s1603_s3 }
  0x80   : > { %s1605_s10 = scalar_lea.vmem %s1604_s3, 256  ;;  %p1606_p9 = scmp.lt.s32.totalorder %s2240_s8, %s1604_s3 }
  0x81   : > { %p1601_p4 = pnand %p1599_p1, %p1585_p3  ;;  %p1607_p0 = scmp.lt.s32.totalorder %s1605_s10, %s1598_s7 }
  0x83   : > { %p1602_p10 = pneg %p1601_p4  ;;  %p1608_p2 = por %p1607_p0, %p1606_p9 }
  0x85   : > { %p1609_p8 = pnand %p1608_p2, %p1602_p10 }
  0x87   : > { %1612 = shalt.err (!%p1609_p8)
}
  0x88   : > { %1337 = dma.hbm_to_vmem [thread:$0]  (!%p2222_p11), %s2256_s2, 128, %s2240_s8, %s2266_s6  }
  0x89   : > { %p2880_p9 = scmp.ne.s32.totalorder %s1917_s26, %s1913_s25  ;;  %p2881_p10 = scmp.eq.s32.totalorder %s2087_s30, 0 }
  0x8a   : > { %s297_s12 = sand.u32 1, %s1921_s27   ;;  %s40_s22 = ssub.s32 %s2243_s24, %s2246_s9 }
  0x8b   : > { %p2299_p3 = por %p2881_p10, %p2880_p9  ;;  %p41_p7 = scmp.eq.s32.totalorder %s40_s22, 0 }
  0x8c   : > { %s1198_s16 = sshll.u32 %s297_s12, 3  ;;  %p2883_p12 = scmp.lt.s32.totalorder %s1925_s28, 3 }
  0x8d   : > { %s2882_s14 = scalar_select %p2299_p3, 1, 0 }
  0x8e   : > { %p2310_p11 = pnand %p2883_p12, %p2260_p13  ;;  %s2885_s25 = sadd.s32 1, %s1921_s27 }
  0x8f   : > { %s2317_s8 = scalar_select %p41_p7, %s1921_s27, %s2885_s25  }
  0x90   : > { %s1287_s7 = scalar_select %p2260_p13, [#allocation3], [#allocation16] }
  0x91   : > { %2886 = sst [smem:[#allocation55_spill]] %s2317_s8  ;;  %p2887_p6 = pmov %p2883_p12 }
  0x92   : > { %s1288_s24 = scalar_select %p2260_p13, %s1925_s28, 0 }
  0x93   : > { %s2981_s7 = smov (!%p2887_p6, %s1287_s7), [#allocation22]  ;;  %p2888_p5 = pmov %p2887_p6 }
  0x94   : > { %s301_s9 = scalar_lea.vmem [#allocation4], %s1198_s16  ;;  %s2331_s10 = sld [smem:[#allocation3 + %s1925_s28]] }
  0x95   : > { %s2983_s24 = smov (!%p2888_p5, %s1288_s24), 0  ;;  %s309_s5 = sshll.u32 %s301_s9, 4  ;;  %s2328_s5 = int_to_ptr.vmem [resolvable:$true] %s309_s5 }
  0x96   : > { %s302_s3 = sld [smem:[%s2981_s7 + %s2983_s24]]  ;;  %s113_s25 = sadd.s32 1, %s1897_s21 }
  0x97   : > { %s2334_s22 = sld [smem:[#allocation3 + %s2084_s29]]  ;;  %p120_p1 = scmp.ne.s32.totalorder %s1897_s21, %s1893_s20 }
  0x98   : > { %s2889_s1 = sld [smem:[#allocation57_spill]]  ;;  %p2890_p13 = scmp.eq.s32.totalorder %s1925_s28, 0 }
  0x99   : > { %s298_s7 = scalar_lea.sflag [#allocation5], %s297_s12  ;;  %p1615_p8 = pneg %p2310_p11 }
  0x9a   : > { %p2348_p0 = por %p120_p1, %p2890_p13 }
  0x9c   : > { %s1199_s4 = sshll.u32 %s302_s3, 7 }
  0x9e   : > { %s2344_s27 = scalar_lea.hbm %s2889_s1, %s1199_s4  ;;  %s1618_s9 = scalar_lea.hbm %s2889_s1, 384 }
  0x9f   : > { %s1613_s24 = scalar_lea.hbm %s2344_s27, 128  ;;  %p1619_p7 = scmp.lt.u32.totalorder %s2344_s27, %s2889_s1 }
  0xa0   : > { %p1614_p2 = scmp.ne.s32.totalorder %s2344_s27, %s1613_s24  ;;  %p1620_p12 = scmp.lt.u32.totalorder %s1618_s9, %s1613_s24 }
  0xa1   : > { %p1622_p5 = scmp.lt.u32.totalorder %s1613_s24, %s2344_s27 }
  0xa2   : > { %p1616_p9 = pnand %p1615_p8, %p1614_p2  ;;  %p1621_p6 = por %p1620_p12, %p1619_p7 }
  0xa4   : > { %p1617_p10 = pneg %p1616_p9  ;;  %p1623_p1 = por %p1622_p5, %p1621_p6 }
  0xa6   : > { %p1624_p13 = pnand %p1623_p1, %p1617_p10 }
  0xa8   : > { %1627 = shalt.err (!%p1624_p13)
}
  0xa9   : > { %s1628_s12 = scalar_lea.vmem %s2328_s5, 128  ;;  %s1930_s4 = smov [#allocation4]  }
  0xaa   : > { %p1629_p2 = scmp.ne.s32.totalorder %s2328_s5, %s1628_s12  ;;  %s1633_s8 = sshll.u32 %s1930_s4, 4  ;;  %s1634_s8 = int_to_ptr.vmem [resolvable:$false] %s1633_s8 }
  0xab   : > { %s1635_s3 = scalar_lea.vmem %s1634_s8, 256  ;;  %p1636_p3 = scmp.lt.s32.totalorder %s2328_s5, %s1634_s8 }
  0xac   : > { %p1631_p9 = pnand %p1629_p2, %p1615_p8  ;;  %p1637_p7 = scmp.lt.s32.totalorder %s1635_s3, %s1628_s12 }
  0xae   : > { %p1632_p4 = pneg %p1631_p9  ;;  %p1638_p12 = por %p1637_p7, %p1636_p3 }
  0xb0   : > { %p1639_p6 = pnand %p1638_p12, %p1632_p4 }
  0xb2   : > { %1642 = shalt.err (!%p1639_p6)
}
  0xb3   : > { %s2892_s24 = sld [smem:[#allocation50_spill]]  ;;  %p2893_p3 = scmp.eq.s32.totalorder %s2087_s30, 0 }
  0xb4   : > { %1322 = dma.hbm_to_vmem [thread:$0]  (!%p2310_p11), %s2344_s27, 128, %s2328_s5, %s298_s7  }
  0xb5   : > { %p2894_p4 = scmp.ne.s32.totalorder %s1893_s20, %s1889_s19  ;;  %s2897_s9 = sld [smem:[#allocation48_spill]] }
  0xb6   : > { %s344_s11 = sand.u32 1, %s1897_s21   ;;  %s110_s12 = ssub.s32 %s2331_s10, %s2334_s22 }
  0xb7   : > { %p2382_p8 = por %p2894_p4, %p2893_p3  ;;  %s1203_s4 = sshll.u32 %s344_s11, 3 }
  0xb8   : > { %p111_p10 = scmp.eq.s32.totalorder %s110_s12, 0  ;;  %s2898_s3 = sld [smem:[#allocation40_spill]] }
  0xb9   : > { %s2895_s2 = scalar_select %p2382_p8, 1, 0 }
  0xba   : > { %s1293_s8 = scalar_select %p2348_p0, [#allocation3], [#allocation18] }
  0xbb   : > { %2896 = sst [smem:[#allocation50_spill]] %s2895_s2  ;;  %s2899_s1 = sld [smem:[#allocation41_spill]] }
  0xbc   : > { %s2394_s23 = scalar_select %p111_p10, %s1897_s21, %s113_s25  }
  0xbd   : > { %s1294_s27 = scalar_select %p2348_p0, %s1925_s28, 0 }
  0xbe   : > { %2900 = sst [smem:[#allocation56_spill]] %s2394_s23  ;;  %p2901_p11 = scmp.lt.s32.totalorder %s1925_s28, 3 }
  0xbf   : > { %s2404_s19 = sld [smem:[#allocation3 + %s2892_s24]]  ;;  %s346_s22 = scalar_lea.vmem [#allocation9], %s1203_s4 }
  0xc0   : > { %s2985_s8 = smov (!%p2901_p11, %s1293_s8), [#allocation24]  ;;  %p2902_p5 = pmov %p2901_p11 }
  0xc1   : > { %s354_s25 = sshll.u32 %s346_s22, 4  ;;  %s1245_s7 = sadd.s32 256, %s2897_s9  ;;  %s2414_s25 = int_to_ptr.vmem [resolvable:$true] %s354_s25 }
  0xc2   : > { %s2987_s27 = smov (!%p2902_p5, %s1294_s27), 0  ;;  %p2903_p1 = pmov %p2902_p5 }
  0xc3   : > { %s347_s10 = sld [smem:[%s2985_s8 + %s2987_s27]]  ;;  %s2905_s11 = sand.u32 127, %s2084_s29 }
  0xc4   : > { %p2410_p13 = pnand %p2903_p1, %p2348_p0  ;;  %s2419_s12 = sadd.s32 %s1245_s7, %s2905_s11 }
  0xc5   : > { %s2422_s21 = sld [smem:[#allocation3 + %s2419_s12]] }
  0xc6   : > { %s2906_s15 = sld [smem:[#allocation59_spill]]  ;;  %p1645_p9 = pneg %p2410_p13 }
  0xc9   : > { %s1204_s23 = sshll.u32 %s347_s10, 7 }
  0xcc   : > { %s2907_s2 = smov %s2906_s15  ;;  %s2427_s17 = scalar_lea.hbm %s2906_s15, %s1204_s23 }
  0xcd   : > { %s1643_s4 = scalar_lea.hbm %s2427_s17, 128  ;;  %s1648_s27 = scalar_lea.hbm %s2907_s2, 384 }
  0xce   : > { %p1644_p2 = scmp.ne.s32.totalorder %s2427_s17, %s1643_s4  ;;  %p1649_p6 = scmp.lt.u32.totalorder %s2427_s17, %s2907_s2 }
  0xcf   : > { %p1650_p3 = scmp.lt.u32.totalorder %s1648_s27, %s1643_s4  ;;  %p1652_p10 = scmp.lt.u32.totalorder %s1643_s4, %s2427_s17 }
  0xd0   : > { %p1646_p7 = pnand %p1645_p9, %p1644_p2 }
  0xd1   : > { %p1651_p4 = por %p1650_p3, %p1649_p6 }
  0xd2   : > { %p1647_p12 = pneg %p1646_p7 }
  0xd3   : > { %p1653_p11 = por %p1652_p10, %p1651_p4 }
  0xd5   : > { %p1654_p5 = pnand %p1653_p11, %p1647_p12 }
  0xd7   : > { %1657 = shalt.err (!%p1654_p5)
}
  0xd8   : > { %s1658_s23 = scalar_lea.vmem %s2414_s25, 128  ;;  %s1931_s10 = smov [#allocation9]  }
  0xd9   : > { %p1659_p1 = scmp.ne.s32.totalorder %s2414_s25, %s1658_s23  ;;  %s1663_s22 = sshll.u32 %s1931_s10, 4  ;;  %s1664_s22 = int_to_ptr.vmem [resolvable:$false] %s1663_s22 }
  0xda   : > { %s1665_s7 = scalar_lea.vmem %s1664_s22, 256  ;;  %p1666_p0 = scmp.lt.s32.totalorder %s2414_s25, %s1664_s22 }
  0xdb   : > { %p1661_p2 = pnand %p1659_p1, %p1645_p9  ;;  %p1667_p6 = scmp.lt.s32.totalorder %s1665_s7, %s1658_s23 }
  0xdd   : > { %p1662_p7 = pneg %p1661_p2  ;;  %p1668_p3 = por %p1667_p6, %p1666_p0 }
  0xdf   : > { %p1669_p4 = pnand %p1668_p3, %p1662_p7 }
  0xe1   : > { %1672 = shalt.err (!%p1669_p4)
}
  0xe2   : > { %s2908_s11 = sld [smem:[#allocation39_spill]]  ;;  %s2909_s16 = sld [smem:[#allocation51_spill]] }
  0xe3   : > { %1332 = dma.hbm_to_vmem [thread:$0]  (!%p2410_p13), %s2427_s17, 128, %s2414_s25, %s2178_s13  }
  0xe4   : > { %s197_s5 = sadd.s32 1, %s2899_s1  ;;  %p2910_p9 = scmp.eq.s32.totalorder %s1925_s28, 0 }
  0xe5   : > { %p2911_p12 = scmp.ne.s32.totalorder %s2899_s1, %s2898_s3  ;;  %s389_s9 = sand.u32 1, %s2899_s1  }
  0xe6   : > { %p2913_p11 = scmp.eq.s32.totalorder %s2087_s30, 0  ;;  %s2914_s8 = sld [smem:[#allocation38_spill]] }
  0xe7   : > { %p2465_p10 = por %p2911_p12, %p2910_p9  ;;  %s2916_s17 = sld [smem:[#allocation37_spill]] }
  0xe8   : > { %p210_p0 = scmp.ne.s32.totalorder %s2898_s3, %s2908_s11  ;;  %s1208_s13 = sshll.u32 %s389_s9, 3 }
  0xe9   : > { %s2917_s25 = sld [smem:[#allocation36_spill]]  ;;  %s194_s3 = ssub.s32 %s2909_s16, %s2422_s21 }
  0xea   : > { %p2472_p5 = por %p210_p0, %p2913_p11  ;;  %p195_p13 = scmp.eq.s32.totalorder %s194_s3, 0 }
  0xeb   : > { %s1299_s18 = scalar_select %p2465_p10, [#allocation3], [#allocation20] }
  0xec   : > { %s2915_s27 = scalar_select %p2472_p5, 1, 0 }
  0xed   : > { %s2989_s1 = smov (!%p195_p13, %s2899_s1), %s197_s5  ;;  %p2918_p1 = scmp.lt.s32.totalorder %s1925_s28, 3 }
  0xee   : > { %s1300_s15 = scalar_select %p2465_p10, %s2892_s24, 0 }
  0xef   : > { %s2991_s18 = smov (!%p2918_p1, %s1299_s18), [#allocation26]  ;;  %p2919_p2 = pmov %p2918_p1 }
  0xf0   : > { %s391_s23 = scalar_lea.vmem [#allocation12], %s1208_s13  ;;  %p2920_p7 = pmov %p2918_p1 }
  0xf1   : > { %s2993_s15 = smov (!%p2919_p2, %s1300_s15), 0  ;;  %s406_s10 = sshll.u32 %s391_s23, 4  ;;  %s2501_s10 = int_to_ptr.vmem [resolvable:$true] %s406_s10 }
  0xf2   : > { %p2494_p6 = pnand %p2920_p7, %p2465_p10  ;;  %s399_s21 = sld [smem:[%s2991_s18 + %s2993_s15]] }
  0xf3   : > { %s2499_s7 = sld [smem:[#allocation3 + %s2419_s12]]  ;;  %s239_s11 = sadd.s32 1, %s2914_s8 }
  0xf4   : > { %p252_p4 = scmp.ne.s32.totalorder %s2916_s17, %s2917_s25  ;;  %s413_s5 = sand.u32 1, %s2914_s8  }
  0xf5   : > { %s2922_s4 = sld [smem:[#allocation61_spill]]  ;;  %p2923_p0 = pmov %p2913_p11 }
  0xf6   : > { %p1675_p10 = pneg %p2494_p6 }
  0xf7   : > { %p2516_p9 = por %p252_p4, %p2923_p0 }
  0xf8   : > { %s1210_s16 = sshll.u32 %s399_s21, 7 }
  0xf9   : > { %s2924_s12 = scalar_select %p2516_p9, 1, 0 }
  0xfb   : > { %s2512_s3 = scalar_lea.hbm %s2922_s4, %s1210_s16  ;;  %s1678_s23 = scalar_lea.hbm %s2922_s4, 384 }
  0xfc   : > { %s1673_s18 = scalar_lea.hbm %s2512_s3, 128  ;;  %p1679_p1 = scmp.lt.u32.totalorder %s2512_s3, %s2922_s4 }
  0xfd   : > { %p1674_p12 = scmp.ne.s32.totalorder %s2512_s3, %s1673_s18  ;;  %p1680_p2 = scmp.lt.u32.totalorder %s1678_s23, %s1673_s18 }
  0xfe   : > { %p1682_p4 = scmp.lt.u32.totalorder %s1673_s18, %s2512_s3 }
  0xff   : > { %p1676_p11 = pnand %p1675_p10, %p1674_p12  ;;  %p1681_p7 = por %p1680_p2, %p1679_p1 }
 0x101   : > { %p1677_p13 = pneg %p1676_p11  ;;  %p1683_p0 = por %p1682_p4, %p1681_p7 }
 0x103   : > { %p1684_p3 = pnand %p1683_p0, %p1677_p13 }
 0x105   : > { %1687 = shalt.err (!%p1684_p3)
}
 0x106   : > { %s1688_s9 = scalar_lea.vmem %s2501_s10, 128  ;;  %s1932_s13 = smov [#allocation12]  }
 0x107   : > { %p1689_p12 = scmp.ne.s32.totalorder %s2501_s10, %s1688_s9  ;;  %s1693_s25 = sshll.u32 %s1932_s13, 4  ;;  %s1694_s25 = int_to_ptr.vmem [resolvable:$false] %s1693_s25 }
 0x108   : > { %s1695_s15 = scalar_lea.vmem %s1694_s25, 256  ;;  %p1696_p5 = scmp.lt.s32.totalorder %s2501_s10, %s1694_s25 }
 0x109   : > { %p1691_p11 = pnand %p1689_p12, %p1675_p10  ;;  %p1697_p1 = scmp.lt.s32.totalorder %s1695_s15, %s1688_s9 }
 0x10b   : > { %p1692_p9 = pneg %p1691_p11  ;;  %p1698_p2 = por %p1697_p1, %p1696_p5 }
 0x10d   : > { %p1699_p7 = pnand %p1698_p2, %p1692_p9 }
 0x10f   : > { %1702 = shalt.err (!%p1699_p7)
}
 0x110   : > { %1342 = dma.hbm_to_vmem [thread:$0]  (!%p2494_p6), %s2512_s3, 128, %s2501_s10, %s2266_s6  }
 0x111   : > { %s236_s18 = ssub.s32 %s2404_s19, %s2499_s7  ;;  %p2925_p5 = scmp.eq.s32.totalorder %s1925_s28, 0 }
 0x112   : > { %p2926_p3 = scmp.ne.s32.totalorder %s2914_s8, %s2916_s17  ;;  %p237_p10 = scmp.eq.s32.totalorder %s236_s18, 0 }
 0x113   : > { %s1211_s22 = sshll.u32 %s413_s5, 3  ;;  %p2927_p13 = scmp.lt.s32.totalorder %s1925_s28, 3 }
 0x114   : > { %p248_p9 = por %p2926_p3, %p2925_p5  ;;  %s417_s19 = scalar_lea.vmem [#allocation13], %s1211_s22 }
 0x115   : > { %s2564_s21 = scalar_select %p237_p10, %s2914_s8, %s239_s11  }
 0x116   : > { %p2557_p4 = pnand %p2927_p13, %p248_p9  ;;  %s2995_s24 = smov (!%p248_p9, %s2892_s24), 0 }
 0x117   : > { %s1302_s16 = scalar_select %p248_p9, [#allocation3], [#allocation21] }
 0x118   : > { %p2929_p6 = pmov %p2927_p13  ;;  %s432_s17 = sshll.u32 %s417_s19, 4  ;;  %s2571_s17 = int_to_ptr.vmem [resolvable:$true] %s432_s17 }
 0x119   : > { %s2931_s9 = sld [smem:[#allocation62_spill]]  ;;  %s414_s11 = scalar_lea.sflag [#allocation14], %s413_s5 }
 0x11a   : > { %s2997_s16 = smov (!%p2929_p6, %s1302_s16), [#allocation27]  ;;  %p2930_p0 = pmov %p2929_p6 }
 0x11b   : > { %p1705_p11 = pneg %p2557_p4 }
 0x11c   : > { %s2999_s24 = smov (!%p2930_p0, %s2995_s24), 0 }
 0x11d   : > { %s425_s6 = sld [smem:[%s2997_s16 + %s2999_s24]] }
 0x11f   : > { %s1708_s15 = scalar_lea.hbm %s2931_s9, 384 }
 0x123   : > { %s1213_s10 = sshll.u32 %s425_s6, 7 }
 0x124   : > { %s2576_s13 = scalar_lea.hbm %s2931_s9, %s1213_s10 }
 0x125   : > { %s1703_s25 = scalar_lea.hbm %s2576_s13, 128  ;;  %p1709_p7 = scmp.lt.u32.totalorder %s2576_s13, %s2931_s9 }
 0x126   : > { %p1704_p12 = scmp.ne.s32.totalorder %s2576_s13, %s1703_s25  ;;  %p1710_p5 = scmp.lt.u32.totalorder %s1708_s15, %s1703_s25 }
 0x127   : > { %p1712_p9 = scmp.lt.u32.totalorder %s1703_s25, %s2576_s13 }
 0x128   : > { %p1706_p1 = pnand %p1705_p11, %p1704_p12  ;;  %p1711_p3 = por %p1710_p5, %p1709_p7 }
 0x12a   : > { %p1707_p2 = pneg %p1706_p1  ;;  %p1713_p10 = por %p1712_p9, %p1711_p3 }
 0x12c   : > { %p1714_p13 = pnand %p1713_p10, %p1707_p2 }
 0x12e   : > { %1717 = shalt.err (!%p1714_p13)
}
 0x12f   : > { %s1718_s8 = scalar_lea.vmem %s2571_s17, 128  ;;  %s1933_s5 = smov [#allocation13]  }
 0x130   : > { %p1719_p6 = scmp.ne.s32.totalorder %s2571_s17, %s1718_s8  ;;  %s1723_s16 = sshll.u32 %s1933_s5, 4  ;;  %s1724_s16 = int_to_ptr.vmem [resolvable:$false] %s1723_s16 }
 0x131   : > { %s1725_s6 = scalar_lea.vmem %s1724_s16, 256  ;;  %p1726_p1 = scmp.lt.s32.totalorder %s2571_s17, %s1724_s16 }
 0x132   : > { %p1721_p0 = pnand %p1719_p6, %p1705_p11  ;;  %p1727_p7 = scmp.lt.s32.totalorder %s1725_s6, %s1718_s8 }
 0x134   : > { %p1722_p12 = pneg %p1721_p0  ;;  %p1728_p5 = por %p1727_p7, %p1726_p1 }
 0x136   : > { %p1729_p3 = pnand %p1728_p5, %p1722_p12 }
 0x138   : > { %1732 = shalt.err (!%p1729_p3)
}
 0x139   : > { %1347 = dma.hbm_to_vmem [thread:$0]  (!%p2557_p4), %s2576_s13, 128, %s2571_s17, %s414_s11  }
 0x13a   : > { %p2932_p2 = scmp.ne.s32.totalorder %s2862_s0, 0 }
 0x13b   : > { %s443_s19 = sand.u32 (!%p2932_p2), 1, %s1917_s26   ;;  %p2933_p11 = scmp.ne.s32.totalorder (!%p2932_p2), %s2882_s14, 0 }
 0x13c   : > { %441 = sbr.rel (%p2932_p2) target bundleno = 1278 (0x4fe), region = 44  ;;  %s2608_s10 = sshll.u32 (!%p2932_p2), %s443_s19, 3 }
 0x13d   : > { %s444_s7 = scalar_lea.sflag (!%p2932_p2), [#allocation5], %s443_s19  ;;  %s447_s3 = scalar_lea.vmem (!%p2932_p2), [#allocation4], %s2608_s10 }
 0x143   : > { %1824 = dma.done.wait (%p2933_p11), %s444_s7, 128  }
 0x144   : > { %1826 = vsyncadd (%p2933_p11), %s444_s7, 4294967168  ;;  %s2934_s23 = sld [smem:[#allocation45_spill]]  ;;  %s2935_s25 = sld [smem:[#allocation49_spill]] }
 0x145   : > { %s452_s17 = sand.u32 1, %s2087_s30  }
 0x146   : > { %s453_s11 = scalar_lea.sflag [#allocation8], %s452_s17 }
 0x14a   : > { %s454_s13 = sand.u32 1, %s2934_s23   ;;  %p2936_p4 = scmp.ne.s32.totalorder %s2935_s25, 0 }
 0x14b   : > { %s2617_s0 = sshll.u32 %s454_s13, 3 }
 0x14c   : > { %s456_s28 = scalar_lea.vmem [#allocation7], %s2617_s0 }
 0x14d   : > { %1828 = dma.done.wait (%p2936_p4), %s453_s11, 128  }
 0x14e   : > { %1830 = vsyncadd (%p2936_p4), %s453_s11, 4294967168  ;;  %s463_s15 = sand.u32 1, %s1893_s20  }
 0x14f   : > { %s2625_s14 = sshll.u32 %s463_s15, 3 }
 0x150   : > { %s465_s18 = scalar_lea.vmem [#allocation9], %s2625_s14 }
 0x151   : > { %1832 = dma.done.wait (%p2382_p8), %s453_s11, 128  }
 0x152   : > { %1834 = vsyncadd (%p2382_p8), %s453_s11, 4294967168  ;;  %s2938_s22 = sld [smem:[#allocation42_spill]]  ;;  %s471_s6 = scalar_lea.sflag [#allocation11], %s452_s17 }
 0x153   : > { %s2939_s8 = sld [smem:[#allocation53_spill]] }
 0x158   : > { %s472_s5 = sand.u32 1, %s2938_s22  }
 0x159   : > { %s2633_s16 = sshll.u32 %s472_s5, 3  ;;  %p2940_p9 = scmp.ne.s32.totalorder %s2939_s8, 0 }
 0x15a   : > { %s474_s19 = scalar_lea.vmem [#allocation10], %s2633_s16 }
 0x15b   : > { %1836 = dma.done.wait (%p2940_p9), %s471_s6, 128  }
 0x15c   : > { %1838 = vsyncadd (%p2940_p9), %s471_s6, 4294967168  ;;  %s2941_s7 = sld [smem:[#allocation40_spill]]  ;;  %p2942_p8 = scmp.ne.s32.totalorder %s2915_s27, 0 }
 0x162   : > { %s481_s23 = sand.u32 1, %s2941_s7  }
 0x163   : > { %s2641_s25 = sshll.u32 %s481_s23, 3 }
 0x164   : > { %s483_s13 = scalar_lea.vmem [#allocation12], %s2641_s25 }
 0x165   : > { %1840 = dma.done.wait (%p2942_p8), %s471_s6, 128  }
 0x166   : > { %1842 = vsyncadd (%p2942_p8), %s471_s6, 4294967168  ;;  %s2943_s11 = sld [smem:[#allocation37_spill]]  ;;  %p2944_p10 = scmp.ne.s32.totalorder %s2924_s12, 0 }
 0x16c   : > { %s488_s17 = sand.u32 1, %s2943_s11  }
 0x16d   : > { %s2649_s24 = sshll.u32 %s488_s17, 3  ;;  %s489_s15 = scalar_lea.sflag [#allocation14], %s488_s17 }
 0x16e   : > { %s492_s22 = scalar_lea.vmem [#allocation13], %s2649_s24 }
 0x16f   : > { %1844 = dma.done.wait (%p2944_p10), %s489_s15, 128  }
 0x170   : > { %1846 = vsyncadd (%p2944_p10), %s489_s15, 4294967168  ;;  %v1934_v0 = vmov 0.0   ;;  %vm1935_vm0 = vmmov 0   ;;  %vm585_vm1 = vcmask 261120   ;;  %v581_v1 = vld [vmem:[%s447_s3] sm:$0xff]  ;;  %v582_v2 = vld [vmem:[%s456_s28] sm:$0xff]  ;;  %v837_v5 = vlaneseq }
 0x171   : > { %1264 = vmatprep.subr.mxu0 %v1934_v0  ;;  %1266 = vmatprep.mubr.msk.f32.mxu0 %vm1935_vm0, %v1934_v0  ;;  %vm849_vm2 = vcmask 64512   ;;  %v844_v22 = vmul.f32 %v582_v2, %v581_v1  ;;  %v583_v23 = vld [vmem:[%s465_s18] sm:$0xff]  ;;  %v584_v24 = vld [vmem:[%s474_s19] sm:$0xff]  ;;  %vm897_vm4 = vcmask 7168   ;;  %s1936_s27 = smov 0.0   ;;  %p2945_p13 = scmp.eq.s32.totalorder %s2087_s30, 0 }
 0x172   : > { %1269 = vmatprep.subr.mxu1 %v1934_v0  ;;  %1271 = vmatprep.mubr.msk.f32.mxu1 %vm1935_vm0, %v1934_v0  ;;  %v838_v9 = vshrl.u32 %v837_v5, 7  ;;  %v840_v10 = vand.u32 127, %v837_v5  ;;  %v921_v26 = vmul.f32 %v584_v24, %v583_v23  ;;  %v926_v28 = vmul.f32 %v583_v23, %v582_v2  ;;  %v969_v43 = vld [vmem:[%s483_s13] sm:$0xff]  ;;  %v976_v45 = vld [vmem:[%s492_s22] sm:$0xff]  ;;  %p1009_p6 = scmp.lt.s32.totalorder %s2087_s30, 3  ;;  %p1350_p0 = scmp.eq.s32.totalorder %s2087_s30, 2 }
 0x173   : > { %1265 = vmatpush3.xpose.msk.msra.mxu0 %vm585_vm1, %v581_v1  ;;  %1270 = vmatpush3.xpose.msk.msra.mxu1 %vm585_vm1, %v582_v2  ;;  %v845_v25 = vsel %vm585_vm1, %v844_v22, 0.0  ;;  %v931_v30 = vmul.f32 %v584_v24, %v581_v1  ;;  %v1228_v44 = vmul.f32 -1.442695, %v969_v43  ;;  %v1229_v46 = vmul.f32 -1.442695, %v976_v45  ;;  %1312 = sst [smem:[#allocation15]] (%p2945_p13), %s1936_s27 }
 0x174   : > { %1274 = vmatprep.subr.mxu0 %v1934_v0  ;;  %vm841_vm3 = vcmp.eq.s32.totalorder %v838_v9, %v840_v10  ;;  %v922_v27 = vsel %vm585_vm1, %v921_v26, 0.0  ;;  %v927_v29 = vsel %vm585_vm1, %v926_v28, 0.0  ;;  %s1010_s12 = scalar_select %p1009_p6, 1.0, 0.0 }
 0x175   : > { %v932_v31 = vsel %vm585_vm1, %v931_v30, 0.0  ;;  %s1018_s19 = sld [smem:[#allocation15]]  ;;  %s2946_s22 = sld [smem:[#allocation63_spill]] }
 0x176   : > { %1267 = vmatmul.mubr.msk.f32.vlgmr.msra.gmra.mrb[0].mxu0 %vm585_vm1, %v581_v1  ;;  %1272 = vmatmul.mubr.msk.f32.vlgmr.msra.gmra.mrb[0].mxu1 %vm585_vm1, %v582_v2  ;;  %s1015_s0 = smul.f32 0.2, %s1010_s12 }
 0x177   : > { %1275 = vmatpush3.xpose.msk.msra.mxu0 %vm585_vm1, %v582_v2  ;;  %1276 = vmatprep.mubr.msk.f32.mxu0 %vm1935_vm0, %v1934_v0 }
 0x17a   : > { %1277 = vmatmul.mubr.msk.f32.vlgmr.msra.gmra.mrb[2].mxu0 %vm585_vm1, %v581_v1 }
 0x17b   : > { %s2947_s2 = smov %s2946_s22  ;;  %s1733_s27 = scalar_lea.hbm %s2946_s22, 16 }
 0x17c   : > { %p1734_p12 = scmp.ne.s32.totalorder %s2947_s2, %s1733_s27  ;;  %p1739_p5 = scmp.lt.u32.totalorder %s1733_s27, %s2947_s2 }
 0x17e   : > { %p1735_p1 = pnand %p1734_p12, %p1350_p0 }
 0x180   : > { %p1736_p7 = pneg %p1735_p1 }
 0x182   : > { %p1741_p3 = pnand %p1739_p5, %p1736_p7 }
 0x249   : > { %v655_v3 = vpop.f32.mrb[0].mxu0  ;;  %v729_v12 = vpop.f32.mrb[0].mxu1 }
 0x24a   : > { %v1268_v4 = vpop.f32.mrb[1].mxu0  ;;  %v733_v13 = vmul.f32 2.0, %v729_v12  ;;  %v1273_v14 = vpop.f32.mrb[1].mxu1  ;;  %v659_v16 = vmul.f32 2.0, %v655_v3 }
 0x24c   : > { %v843_v15 = vsel %vm841_vm3, -1e+30, %v733_v13  ;;  %v842_v17 = vsel %vm841_vm3, -1e+30, %v659_v16 }
 0x24d   : > { %v800_v6 = vpop.f32.mrb[2].mxu0  ;;  %v850_v18 = vsel %vm849_vm2, %v842_v17, -inf  ;;  %v876_v21 = vsel %vm849_vm2, %v843_v15, -inf }
 0x24e   : > { %v804_v7 = vmul.f32 2.0, %v800_v6  ;;  %v1278_v8 = vpop.f32.mrb[3].mxu0 }
 0x250   : > { %805 = vxpose.xlu0.b32.start.end [1/1] (short) (narrow) %v804_v7, 8  ;;  %v853_v11 = vsel %vm849_vm2, %v804_v7, -inf }
 0x251   : > { %854 = vmax.xlane.f32.xlu1 %v853_v11 }
 0x27d   : > { %851 = vmax.xlane.f32.xlu0 %v850_v18 }
 0x2d0   : > { %v821_v19 = vpop.trf.xlu0 }
 0x2d1   : > { %v873_v20 = vsel %vm849_vm2, %v821_v19, -inf }
 0x2d2   : > { %874 = vmax.xlane.f32.xlu1 %v873_v20 }
 0x2d6   : > { %877 = vmax.xlane.f32.xlu1 %v876_v21 }
 0x2da   : > { %846 = vadd.xlane.f32.xlu1 %v845_v25 }
 0x2de   : > { %923 = vadd.xlane.f32.xlu1 %v922_v27  ;;  %v855_v32 = vpop.xlane.xlu1 %854 }
 0x2e2   : > { %928 = vadd.xlane.f32.xlu1 %v927_v29 }
 0x2e6   : > { %933 = vadd.xlane.f32.xlu1 %v932_v31 }
 0x30a   : > { %v852_v33 = vpop.xlane.xlu0 %851 }
 0x30b   : > { %v2678_v34 = vmax.f32 %v852_v33, %v855_v32 }
 0x30d   : > { %v857_v35 = vsub.f32 %v842_v17, %v2678_v34  ;;  %v863_v36 = vsub.f32 %v804_v7, %v2678_v34 }
 0x30f   : > { %v858_v37 = vmul.f32 1.442695, %v857_v35  ;;  %v864_v38 = vmul.f32 1.442695, %v863_v36 }
 0x311   : > { %1509 = vpow2.f32 %v858_v37 }
 0x312   : > { %1511 = vpow2.f32 %v864_v38 }
 0x313   : > { %1513 = vpow2.f32 %v1228_v44 }
 0x314   : > { %1515 = vpow2.f32 %v1229_v46 }
 0x31b   : > { %v1510_v39 = vpop.eup %1509 }
 0x31c   : > { %v860_v40 = vsel %vm849_vm2, %v1510_v39, 0.0  ;;  %v1512_v41 = vpop.eup %1511 }
 0x31d   : > { %861 = vadd.xlane.f32.xlu1 %v860_v40  ;;  %v866_v42 = vsel %vm849_vm2, %v1512_v41, 0.0  ;;  %v1514_v48 = vpop.eup %1513 }
 0x31e   : > { %v973_v51 = vadd.f32 1.0, %v1514_v48  ;;  %v1516_v54 = vpop.eup %1515 }
 0x31f   : > { %v980_v57 = vadd.f32 1.0, %v1516_v54 }
 0x320   : > { %1517 = vrcp.f32 %v973_v51 }
 0x321   : > { %867 = vadd.xlane.f32.xlu1 %v866_v42 }
 0x32a   : > { %v2692_v60 = vpop.eup %1517 }
 0x32b   : > { %v983_v1 = vmul.f32 %v2692_v60, %v2692_v60 }
 0x32d   : > { %v984_v4 = vsel %vm585_vm1, %v983_v1, 0.0 }
 0x35f   : > { %v875_v47 = vpop.xlane.xlu1 %874 }
 0x363   : > { %v878_v49 = vpop.xlane.xlu1 %877 }
 0x364   : > { %v2688_v50 = vmax.f32 %v875_v47, %v878_v49 }
 0x366   : > { %v880_v52 = vsub.f32 %v821_v19, %v2688_v50  ;;  %v886_v53 = vsub.f32 %v843_v15, %v2688_v50 }
 0x367   : > { %v847_v58 = vpop.xlane.xlu1 %846 }
 0x368   : > { %v881_v55 = vmul.f32 1.442695, %v880_v52  ;;  %v887_v56 = vmul.f32 1.442695, %v886_v53  ;;  %v2703_v7 = vmul.f32 2.0, %v847_v58 }
 0x36a   : > { %1519 = vpow2.f32 %v881_v55 }
 0x36b   : > { %1521 = vpow2.f32 %v887_v56  ;;  %v924_v59 = vpop.xlane.xlu1 %923 }
 0x36c   : > { %1523 = vrcp.f32 %v980_v57  ;;  %v925_v8 = vmul.f32 2.0, %v924_v59 }
 0x36f   : > { %v929_v0 = vpop.xlane.xlu1 %928 }
 0x370   : > { %v930_v9 = vmul.f32 2.0, %v929_v0 }
 0x372   : > { %v936_v12 = vmax.f32 %v925_v8, %v930_v9 }
 0x373   : > { %v934_v6 = vpop.xlane.xlu1 %933 }
 0x374   : > { %v1520_v61 = vpop.eup %1519  ;;  %v935_v10 = vmul.f32 2.0, %v934_v6 }
 0x375   : > { %v883_v62 = vsel %vm849_vm2, %v1520_v61, 0.0  ;;  %v1522_v63 = vpop.eup %1521 }
 0x376   : > { %884 = vadd.xlane.f32.xlu1 %v883_v62  ;;  %v2697_v2 = vpop.eup %1523  ;;  %v889_v3 = vsel %vm849_vm2, %v1522_v63, 0.0  ;;  %v937_v13 = vmax.f32 %v935_v10, %v2703_v7 }
 0x377   : > { %v989_v5 = vmul.f32 %v2697_v2, %v2697_v2 }
 0x378   : > { %v938_v14 = vmax.f32 %v936_v12, %v937_v13 }
 0x379   : > { %v990_v11 = vsel %vm585_vm1, %v989_v5, 0.0 }
 0x37a   : > { %890 = vadd.xlane.f32.xlu1 %v889_v3  ;;  %v939_v15 = vsub.f32 %v925_v8, %v938_v14  ;;  %v942_v16 = vsub.f32 %v930_v9, %v938_v14  ;;  %v946_v19 = vsub.f32 %v935_v10, %v938_v14  ;;  %v950_v21 = vsub.f32 %v2703_v7, %v938_v14 }
 0x37c   : > { %v940_v17 = vmul.f32 1.442695, %v939_v15  ;;  %v943_v18 = vmul.f32 1.442695, %v942_v16  ;;  %v947_v20 = vmul.f32 1.442695, %v946_v19 }
 0x37d   : > { %v951_v22 = vmul.f32 1.442695, %v950_v21 }
 0x37e   : > { %985 = vadd.xlane.f32.xlu1 %v984_v4  ;;  %1525 = vpow2.f32 %v940_v17 }
 0x37f   : > { %1527 = vpow2.f32 %v943_v18 }
 0x380   : > { %1529 = vpow2.f32 %v947_v20 }
 0x381   : > { %1531 = vpow2.f32 %v951_v22 }
 0x382   : > { %991 = vadd.xlane.f32.xlu1 %v990_v11 }
 0x388   : > { %v1526_v23 = vpop.eup %1525 }
 0x389   : > { %v1528_v24 = vpop.eup %1527 }
 0x38a   : > { %v945_v25 = vadd.f32 %v1528_v24, %v1526_v23  ;;  %v1530_v26 = vpop.eup %1529 }
 0x38b   : > { %v1532_v28 = vpop.eup %1531 }
 0x38c   : > { %v949_v27 = vadd.f32 %v1530_v26, %v945_v25 }
 0x38e   : > { %v953_v29 = vadd.f32 %v1532_v28, %v949_v27 }
 0x390   : > { %1533 = vlog2.f32 %v953_v29 }
 0x39a   : > { %v1534_v33 = vpop.eup %1533 }
 0x39b   : > { %v955_v35 = vmul.f32 0.6931472, %v1534_v33 }
 0x39d   : > { %v956_v38 = vadd.f32 %v955_v35, %v938_v14 }
 0x39f   : > { %v957_v41 = vsub.f32 %v956_v38, %v925_v8 }
 0x3a1   : > { %v958_v43 = vsel %vm897_vm4, %v957_v41, 0.0 }
 0x3aa   : > { %v862_v30 = vpop.xlane.xlu1 %861 }
 0x3ae   : > { %v868_v31 = vpop.xlane.xlu1 %867 }
 0x3af   : > { %v869_v32 = vadd.f32 %v868_v31, %v862_v30 }
 0x3b1   : > { %1535 = vlog2.f32 %v869_v32 }
 0x3bb   : > { %v1536_v36 = vpop.eup %1535 }
 0x3bc   : > { %v871_v37 = vmul.f32 0.6931472, %v1536_v36 }
 0x3be   : > { %v872_v39 = vadd.f32 %v871_v37, %v2678_v34 }
 0x3c0   : > { %v896_v40 = vsub.f32 %v872_v39, %v2703_v7 }
 0x3c2   : > { %v898_v42 = vsel %vm897_vm4, %v896_v40, 0.0 }
 0x3c3   : > { %899 = vadd.xlane.f32.xlu0 %v898_v42 }
 0x3c7   : > { %959 = vadd.xlane.f32.xlu0 %v958_v43 }
 0x403   : > { %v885_v44 = vpop.xlane.xlu1 %884 }
 0x407   : > { %v891_v45 = vpop.xlane.xlu1 %890 }
 0x408   : > { %v892_v46 = vadd.f32 %v891_v45, %v885_v44 }
 0x40a   : > { %1537 = vlog2.f32 %v892_v46 }
 0x40b   : > { %v986_v47 = vpop.xlane.xlu1 %985 }
 0x40c   : > { %v987_v48 = vmax.f32 %v986_v47, 1e-24 }
 0x40e   : > { %1539 = vrsqrt.f32 %v987_v48 }
 0x40f   : > { %v992_v49 = vpop.xlane.xlu1 %991 }
 0x410   : > { %v993_v51 = vmax.f32 %v992_v49, 1e-24 }
 0x412   : > { %1541 = vrsqrt.f32 %v993_v51 }
 0x414   : > { %v1538_v34 = vpop.eup %1537 }
 0x415   : > { %v894_v52 = vmul.f32 0.6931472, %v1538_v34 }
 0x417   : > { %v895_v53 = vadd.f32 %v894_v52, %v2688_v50 }
 0x418   : > { %v1540_v55 = vpop.eup %1539 }
 0x419   : > { %v908_v54 = vsub.f32 %v895_v53, %v2703_v7  ;;  %v995_v58 = vmul.f32 %v1540_v55, %v2692_v60 }
 0x41b   : > { %v909_v56 = vsel %vm897_vm4, %v908_v54, 0.0 }
 0x41c   : > { %v1542_v57 = vpop.eup %1541  ;;  %910 = vadd.xlane.f32.xlu1 %v909_v56 }
 0x41d   : > { %v996_v59 = vmul.f32 %v1542_v57, %v2697_v2 }
 0x41f   : > { %v997_v61 = vmul.f32 %v996_v59, %v995_v58 }
 0x421   : > { %v998_v62 = vsel %vm585_vm1, %v997_v61, 0.0 }
 0x422   : > { %999 = vadd.xlane.f32.xlu1 %v998_v62 }
 0x450   : > { %v900_v63 = vpop.xlane.xlu0 %899 }
 0x451   : > { %v901_v0 = vrot.slane %v900_v63, 4 }
 0x453   : > { %v902_v1 = vadd.f32 %v901_v0, %v900_v63 }
 0x454   : > { %v960_v6 = vpop.xlane.xlu0 %959 }
 0x455   : > { %v903_v50 = vrot.slane %v902_v1, 2  ;;  %v961_v7 = vrot.slane %v960_v6, 4 }
 0x457   : > { %v904_v3 = vadd.f32 %v903_v50, %v902_v1  ;;  %v962_v60 = vadd.f32 %v961_v7, %v960_v6 }
 0x459   : > { %v905_v4 = vrot.slane %v904_v3, 1  ;;  %v963_v8 = vrot.slane %v962_v60, 2 }
 0x45b   : > { %v906_v5 = vadd.f32 %v905_v4, %v904_v3  ;;  %v964_v11 = vadd.f32 %v963_v8, %v962_v60 }
 0x45d   : > { %1279 = vpush %v906_v5  ;;  %v965_v16 = vrot.slane %v964_v11, 1 }
 0x45f   : > { %v966_v21 = vadd.f32 %v965_v16, %v964_v11 }
 0x48e   : > { %s1280_s10 = spop %1279 }
 0x4a9   : > { %v911_v2 = vpop.xlane.xlu1 %910 }
 0x4aa   : > { %v912_v9 = vrot.slane %v911_v2, 4 }
 0x4ac   : > { %v913_v10 = vadd.f32 %v912_v9, %v911_v2 }
 0x4ae   : > { %v914_v12 = vrot.slane %v913_v10, 2 }
 0x4af   : > { %v1000_v13 = vpop.xlane.xlu1 %999 }
 0x4b0   : > { %v1001_v14 = vrot.slane %v1000_v13, 4  ;;  %v915_v15 = vadd.f32 %v914_v12, %v913_v10 }
 0x4b2   : > { %v1002_v17 = vadd.f32 %v1001_v14, %v1000_v13  ;;  %v916_v18 = vrot.slane %v915_v15, 1 }
 0x4b4   : > { %v1003_v19 = vrot.slane %v1002_v17, 2  ;;  %v917_v20 = vadd.f32 %v916_v18, %v915_v15 }
 0x4b6   : > { %v1004_v22 = vadd.f32 %v1003_v19, %v1002_v17  ;;  %1281 = vpush %v917_v20 }
 0x4b7   : > { %1283 = vpush %v966_v21 }
 0x4b8   : > { %v1005_v23 = vrot.slane %v1004_v22, 1 }
 0x4ba   : > { %v1006_v24 = vadd.f32 %v1005_v23, %v1004_v22 }
 0x4bc   : > { %1285 = vpush %v1006_v24 }
 0x4e7   : > { %s1282_s3 = spop %1281 }
 0x4e8   : > { %s919_s28 = sadd.f32 %s1282_s3, %s1280_s10  ;;  %s1284_s14 = spop %1283 }
 0x4e9   : > { %s968_s18 = smul.f32 0.125, %s1284_s14 }
 0x4ea   : > { %s920_s8 = smul.f32 0.0625, %s919_s28 }
 0x4eb   : > { %s1012_s5 = smul.f32 0.3, %s968_s18 }
 0x4ec   : > { %s1011_s16 = smul.f32 0.5, %s920_s8 }
 0x4ed   : > { %s1286_s6 = spop %1285 }
 0x4ee   : > { %s1013_s7 = sadd.f32 %s1012_s5, %s1011_s16  ;;  %s1008_s23 = smul.f32 0.00390625, %s1286_s6 }
 0x4f0   : > { %s1014_s25 = smul.f32 %s1013_s7, %s1010_s12 }
 0x4f1   : > { %s1016_s13 = smul.f32 %s1015_s0, %s1008_s23 }
 0x4f3   : > { %s1017_s11 = sadd.f32 %s1016_s13, %s1014_s25 }
 0x4f5   : > { %s1019_s17 = sadd.f32 %s1018_s19, %s1017_s11 }
 0x4f7   : > { %1021 = sst [smem:[#allocation15]] %s1019_s17 }
 0x4f8   : > { %1744 = shalt.err (!%p1741_p3)
}
 0x4f9   : > { %s1937_s12 = smov [#allocation15]  }
 0x4fa   : > { %1314 = dma.smem_to_hbm (%p1350_p0), %s1937_s12, 16, %s2947_s2, [#allocation6]  }
 0x4fb   : > { %1848 = dma.done.wait (%p1350_p0), [#allocation6], 16  }
 0x4fc   : > { %1850 = vsyncadd (%p1350_p0), [#allocation6], 4294967280 }
 0x4fd   : > { %1035 = sfence }
 0x4fe PF: > { %s2948_s11 = sld [smem:[#allocation37_spill]]  ;;  %s2949_s12 = sld [smem:[#allocation38_spill]] }
 0x4ff   : > { %s2950_s14 = sld [smem:[#allocation40_spill]]  ;;  %s2951_s0 = sld [smem:[#allocation41_spill]] }
 0x500   : > { %s2952_s16 = sld [smem:[#allocation42_spill]]  ;;  %s2953_s17 = sld [smem:[#allocation43_spill]] }
 0x501   : > { %s2954_s18 = sld [smem:[#allocation54_spill]]  ;;  %s2955_s8 = sld [smem:[#allocation44_spill]] }
 0x502   : > { %s2956_s5 = sld [smem:[#allocation56_spill]]  ;;  %s2957_s22 = sld [smem:[#allocation45_spill]] }
 0x503   : > { %s2958_s23 = sld [smem:[#allocation46_spill]]  ;;  %s2959_s24 = sld [smem:[#allocation52_spill]] }
 0x504   : > { %p31_p2 = scmp.ge.s32.totalorder %s2084_s29, 5   ;;  %s2960_s6 = sld [smem:[#allocation47_spill]] }
 0x505   : > { %s2961_s27 = sld [smem:[#allocation55_spill]]  ;;  %s2962_s13 = smov %s2564_s21 }
 0x506   : > { %s2963_s15 = smov %s2989_s1  ;;  %s2964_s19 = smov %s1893_s20 }
 0x507   : > { %s2965_s20 = smov %s2955_s8  ;;  %s2967_s25 = smov %s1917_s26 }
 0x508   : > { %s2966_s21 = smov %s2956_s5  ;;  %s2969_s28 = smov %s2084_s29 }
 0x509   :  { %33 = sbr.rel (!%p31_p2) target bundleno = 32 (0x20), region = 148 }
 0x50a   : > { %s2968_s26 = smov %s2960_s6 }
 0x510   :  { %1041 = vsyncpa [#allocation5], 1 }
 0x511   :  { %1043 = vsyncpa [#allocation5 + $0x1], 1 }
 0x512   :  { %1044 = vsyncpa [#allocation8], 1 }
 0x513   :  { %1046 = vsyncpa [#allocation8 + $0x1], 1 }
 0x514   :  { %1047 = vsyncpa [#allocation11], 1 }
 0x515   :  { %1049 = vsyncpa [#allocation11 + $0x1], 1 }
 0x516   :  { %1050 = vsyncpa [#allocation14], 1 }
 0x517   :  { %1052 = vsyncpa [#allocation14 + $0x1], 1 }
 0x518   :  { %1053 = vsyncpa [#allocation6], 1 }
 0x519   :  { %1055 = vsyncpa [#allocation6 + $0x1], 1 }

</bundles_post_ra>
